<compile_context>
chip_gen: v7x
topology: tpu7x:2x2x1
jax: 0.10.0
libtpu: 0.0.40
codegen_flags: <defaults>
</compile_context>

<pallas_src>
import functools

import jax
import jax.numpy as jnp
from jax.experimental import pallas as pl
from jax.experimental.pallas import tpu as pltpu


def autopad(k, p=None):
    if p is None:
        p = k // 2 if isinstance(k, int) else [x // 2 for x in k]
    return p


def _round_up(v, m):
    return ((v + m - 1) // m) * m


def _choose_row_tile(Ho, Wo, max_rows=2048):
    """Largest divisor Ht of Ho with Ht*Wo <= max_rows and (Ht*Wo) % 8 == 0."""
    if Ho * Wo <= max_rows:
        return Ho
    for d in range(Ho, 0, -1):
        if Ho % d == 0 and d * Wo <= max_rows and (d * Wo) % 8 == 0:
            return d
    return Ho  # fall back to whole image (block == full dim is always legal)


# ----------------------------- Pallas kernel --------------------------------
def _conv_s1_kernel(x_ref, w_ref, b_ref, o_ref, *, k, Ht, Wo, TC2,
                    num_row_tiles, weights_resident):
    """Stride-1 fused-im2col conv for one (image, row-tile, C2-tile).

    x_ref: (1, Hb, Wb, C1e)                 bf16  padded NHWC input (VMEM resident per n)
    w_ref: (k, k*C1e, C2_pad) or (..., TC2) bf16  kw-merged weights
    b_ref: (1, TC2)                         f32   bias tile
    o_ref: (1, Ht*Wo, TC2)                        flat, lane-dense output tile
    """
    C1e = x_ref.shape[-1]
    M_t = Ht * Wo

    # Output-row offset of this tile (static 0 when there is no row tiling).
    h0 = 0 if num_row_tiles == 1 else pl.program_id(1) * Ht
    if weights_resident:
        c2_off = pl.multiple_of(pl.program_id(2) * TC2, 128)

    acc = None
    for kh in range(k):
        # kw-merged LHS: (M_t, k*C1e); column index = kw*C1e + ci.
        parts = [x_ref[0, pl.ds(h0 + kh, Ht), kw:kw + Wo, :] for kw in range(k)]
        if k > 1:
            lhs = jnp.concatenate(parts, axis=-1).reshape(M_t, k * C1e)
        else:
            lhs = parts[0].reshape(M_t, C1e)

        if weights_resident:
            w_kh = w_ref[kh, :, pl.ds(c2_off, TC2)]       # (k*C1e, TC2)
        else:
            w_kh = w_ref[kh]                              # (k*C1e, TC2)

        contrib = jnp.dot(lhs, w_kh, preferred_element_type=jnp.float32)
        acc = contrib if acc is None else acc + contrib   # f32 value accumulation

    # Bias + cast fused into the single lane-dense epilogue store.
    o_ref[...] = (acc + b_ref[...]).astype(o_ref.dtype).reshape(o_ref.shape)


# ------------------------------ Conv wrapper ---------------------------------
@functools.partial(jax.jit, static_argnames=("k", "s", "p"))
def default_conv_forward(x, weight, bias, *, k, s, p):
    """Equivalent of default_conv.forward (groups=1, bias=True).

    x:      (N, C1, H, W)   NCHW
    weight: (C2, C1, k, k)  PyTorch Conv2d layout
    bias:   (C2,)
    returns (N, C2, Ho, Wo) NCHW
    """
    N, C1, H, W = x.shape
    C2 = weight.shape[0]
    Ho = (H + 2 * p - k) // s + 1
    Wo = (W + 2 * p - k) // s + 1
    out_dtype = x.dtype

    # NCHW -> NHWC + spatial zero pad.
    # TODO(synk): when chaining layers, keep activations NHWC+bf16 between
    # layers to avoid this transpose/pad/cast HBM pass per layer.
    x_pad = jnp.pad(jnp.transpose(x, (0, 2, 3, 1)), ((0, 0), (p, p), (p, p), (0, 0)))
    w_khkw = jnp.transpose(weight, (2, 3, 1, 0))           # (k, k, C1, C2)

    # Stride > 1: space-to-depth so the kernel only ever runs a stride-1 conv.
    if s > 1:
        ke = (k - 1) // s + 1                              # effective kernel size
        C1e = s * s * C1
        Hp_t = (Ho + ke - 1) * s
        Wp_t = (Wo + ke - 1) * s
        Hp, Wp = x_pad.shape[1], x_pad.shape[2]
        x_pad = jnp.pad(x_pad, ((0, 0), (0, max(0, Hp_t - Hp)),
                                (0, max(0, Wp_t - Wp)), (0, 0)))[:, :Hp_t, :Wp_t, :]
        x_pad = x_pad.reshape(N, Hp_t // s, s, Wp_t // s, s, C1)
        x_pad = jnp.transpose(x_pad, (0, 1, 3, 2, 4, 5)).reshape(
            N, Hp_t // s, Wp_t // s, C1e)
        w_full = jnp.zeros((ke * s, ke * s, C1, C2), w_khkw.dtype)
        w_full = w_full.at[:k, :k].set(w_khkw)
        w_khkw = jnp.transpose(
            w_full.reshape(ke, s, ke, s, C1, C2), (0, 2, 1, 3, 4, 5)
        ).reshape(ke, ke, C1e, C2)
        k_eff = ke
    else:
        C1e = C1
        k_eff = k

    x_pad = x_pad.astype(jnp.bfloat16)
    Hb, Wb = x_pad.shape[1], x_pad.shape[2]

    # Lane-dense C2; weights merged over (kw, ci): contraction depth = k_eff*C1e.
    C2_pad = _round_up(C2, 128)
    TC2 = 256 if (C2_pad % 256 == 0 and C2_pad >= 512) else 128   # 128 is v5e-friendly
    w_m = jnp.pad(w_khkw.reshape(k_eff, k_eff * C1e, C2),
                  ((0, 0), (0, 0), (0, C2_pad - C2))).astype(jnp.bfloat16)
    b_pad = jnp.pad(bias, (0, C2_pad - C2)).astype(jnp.float32).reshape(1, C2_pad)

    # Output-row tiling (shrinks acc / output block; image stays VMEM resident).
    Ht = _choose_row_tile(Ho, Wo)
    n_m = Ho // Ht
    n_j = C2_pad // TC2

    # Small weight slab -> constant-index BlockSpec (VMEM resident whole grid).
    weights_resident = (w_m.size * 2) <= (6 << 20)
    if weights_resident:
        w_spec = pl.BlockSpec((k_eff, k_eff * C1e, C2_pad), lambda n, m, j: (0, 0, 0))
    else:
        w_spec = pl.BlockSpec((k_eff, k_eff * C1e, TC2), lambda n, m, j: (0, 0, j))

    # VMEM budget derived from actual block bytes, capped at 48 MiB (v7x-safe).
    out_bytes = jnp.dtype(out_dtype).itemsize
    need = (2 * Hb * Wb * C1e * 2                 # input block (double buffered)
            + 2 * w_m.size * 2                    # weight slab
            + 2 * Ht * Wo * TC2 * out_bytes       # output block
            + Ht * Wo * TC2 * 4                   # f32 accumulation value
            + 2 * Ht * Wo * k_eff * C1e * 2       # kw-merged LHS temporaries
            + 2 * C2_pad * 4                      # bias
            + (4 << 20))                          # headroom
    vmem_limit = int(min(max(need, 32 << 20), 48 << 20))
    # TODO(synk): if `need` exceeds ~48 MiB (huge H*W*C1e), add halo row tiling
    # of the *input* block (pl.ANY + make_async_copy) as well.

    kernel = functools.partial(
        _conv_s1_kernel, k=k_eff, Ht=Ht, Wo=Wo, TC2=TC2,
        num_row_tiles=n_m, weights_resident=weights_resident)

    # Prefer splitting batch / row tiles across megacores (disjoint input DMA).
    j_sem = "arbitrary" if (N * n_m) >= 2 else "parallel"

    out_flat = pl.pallas_call(
        kernel,
        out_shape=jax.ShapeDtypeStruct((N, Ho * Wo, C2_pad), out_dtype),
        grid_spec=pltpu.PrefetchScalarGridSpec(
            num_scalar_prefetch=0,
            grid=(N, n_m, n_j),
            in_specs=[
                pl.BlockSpec((1, Hb, Wb, C1e), lambda n, m, j: (n, 0, 0, 0)),
                w_spec,
                pl.BlockSpec((1, TC2), lambda n, m, j: (0, j)),
            ],
            out_specs=pl.BlockSpec((1, Ht * Wo, TC2), lambda n, m, j: (n, m, j)),
        ),
        compiler_params=pltpu.CompilerParams(
            dimension_semantics=("parallel", "parallel", j_sem),
            vmem_limit_bytes=vmem_limit,
        ),
    )(x_pad, w_m, b_pad)

    # TODO(synk): for tiny C2, alias into a pre-shaped buffer to avoid writing
    # the C2 lane padding back to HBM.
    out = out_flat[:, :, :C2].reshape(N, Ho, Wo, C2)
    return jnp.transpose(out, (0, 3, 1, 2))                 # NHWC -> NCHW


# --------------------------------- Demo --------------------------------------
if __name__ == "__main__":
    def reference(x, weight, bias, k, s, p):
        # Same bf16 rounding of inputs/weights the kernel applies; f32 accumulation.
        x_bf = x.astype(jnp.bfloat16).astype(jnp.float32)
        w_bf = weight.astype(jnp.bfloat16).astype(jnp.float32)
        out = jax.lax.conv_general_dilated(
            x_bf, w_bf, window_strides=(s, s), padding=[(p, p), (p, p)],
            dimension_numbers=("NCHW", "OIHW", "NCHW"))
        return out + bias.reshape(1, -1, 1, 1)

    key = jax.random.PRNGKey(0)
    configs = [
        # (N, C1, H,  W,  C2, k, s)
        (2, 4, 16, 16, 8, 3, 1),    # default_conv(4, 8, k=3, s=1), autopad p=1
        (2, 4, 16, 16, 8, 3, 2),    # strided path (space-to-depth rewrite)
        (1, 8, 48, 48, 16, 3, 1),   # exercises output-row tiling
    ]
    for idx, (N, C1, H, W, C2, K, S) in enumerate(configs):
        P = autopad(K)
        key, kx, kw, kb = jax.random.split(key, 4)
        x = jax.random.normal(kx, (N, C1, H, W), dtype=jnp.float32)
        weight = jax.random.normal(kw, (C2, C1, K, K), dtype=jnp.float32) * 0.1
        bias = jax.random.normal(kb, (C2,), dtype=jnp.float32) * 0.1

        out = jax.block_until_ready(
            default_conv_forward(x, weight, bias, k=K, s=S, p=P))
        ref = reference(x, weight, bias, K, S, P)
        assert out.shape == ref.shape, (idx, out.shape, ref.shape)
        assert jnp.allclose(out, ref, atol=2e-3, rtol=2e-3), f"mismatch cfg {idx}"

    print("KERNEL_OK")
</pallas_src>

<mosaic_0001>
module attributes {stable_mosaic.version = 11 : i64} {
  func.func @_conv_s1_kernel(%arg0: i32, %arg1: i32, %arg2: i32, %arg3: memref<1x18x18x4xbf16, #tpu.memory_space<vmem>>, %arg4: memref<3x12x128xbf16, #tpu.memory_space<vmem>>, %arg5: memref<1x128xf32, #tpu.memory_space<vmem>>, %arg6: memref<1x256x128xf32, #tpu.memory_space<vmem>>) attributes {dimension_semantics = [#tpu.dimension_semantics<parallel>, #tpu.dimension_semantics<parallel>, #tpu.dimension_semantics<arbitrary>], iteration_bounds = array<i64: 2, 1, 1>, scalar_prefetch = 0 : i64, scratch_operands = 0 : i64, tpu.core_type = #tpu.core_type<tc>, window_params = [{transform_indices = @transform_0, window_bounds = array<i64: 1, 18, 18, 4>}, {pipeline_mode = #tpu.pipeline_mode<synchronous>, transform_indices = @transform_1, window_bounds = array<i64: 3, 12, 128>}, {transform_indices = @transform_2, window_bounds = array<i64: 1, 128>}, {transform_indices = @transform_3, window_bounds = array<i64: 1, 256, 128>}]} {
    %c128_i32 = arith.constant 128 : i32
    %0 = arith.muli %arg2, %c128_i32 : i32
    %1 = tpu.assume_multiple %0, 128 : i32
    %c0 = arith.constant 0 : index
    %c0_0 = arith.constant 0 : index
    %c0_1 = arith.constant 0 : index
    %c0_2 = arith.constant 0 : index
    %2 = vector.load %arg3[%c0, %c0_0, %c0_1, %c0_2] : memref<1x18x18x4xbf16, #tpu.memory_space<vmem>>, vector<1x16x16x4xbf16>
    %3 = vector.shape_cast %2 : vector<1x16x16x4xbf16> to vector<16x16x4xbf16>
    %c0_3 = arith.constant 0 : index
    %c0_4 = arith.constant 0 : index
    %c1 = arith.constant 1 : index
    %c0_5 = arith.constant 0 : index
    %4 = vector.load %arg3[%c0_3, %c0_4, %c1, %c0_5] : memref<1x18x18x4xbf16, #tpu.memory_space<vmem>>, vector<1x16x16x4xbf16>
    %5 = vector.shape_cast %4 : vector<1x16x16x4xbf16> to vector<16x16x4xbf16>
    %c0_6 = arith.constant 0 : index
    %c0_7 = arith.constant 0 : index
    %c2 = arith.constant 2 : index
    %c0_8 = arith.constant 0 : index
    %6 = vector.load %arg3[%c0_6, %c0_7, %c2, %c0_8] : memref<1x18x18x4xbf16, #tpu.memory_space<vmem>>, vector<1x16x16x4xbf16>
    %7 = vector.shape_cast %6 : vector<1x16x16x4xbf16> to vector<16x16x4xbf16>
    %8 = tpu.concatenate %3, %5, %7 in 2 : vector<16x16x4xbf16>, vector<16x16x4xbf16>, vector<16x16x4xbf16> -> vector<16x16x12xbf16>
    %9 = vector.shape_cast %8 : vector<16x16x12xbf16> to vector<256x12xbf16>
    %c0_9 = arith.constant 0 : index
    %c0_10 = arith.constant 0 : index
    %10 = arith.index_cast %1 : i32 to index
    %11 = vector.load %arg4[%c0_9, %c0_10, %10] : memref<3x12x128xbf16, #tpu.memory_space<vmem>>, vector<1x12x128xbf16>
    %12 = vector.shape_cast %11 : vector<1x12x128xbf16> to vector<12x128xbf16>
    %cst = arith.constant dense<0.000000e+00> : vector<256x128xf32>
    %13 = tpu.matmul %9, %12, %cst {dimension_numbers = #tpu.dot_dimension_numbers<[1], [0], [0], [1], [0, 0, 1, 1], [], []>} : vector<256x12xbf16>, vector<12x128xbf16>, vector<256x128xf32> -> vector<256x128xf32>
    %c0_11 = arith.constant 0 : index
    %c1_12 = arith.constant 1 : index
    %c0_13 = arith.constant 0 : index
    %c0_14 = arith.constant 0 : index
    %14 = vector.load %arg3[%c0_11, %c1_12, %c0_13, %c0_14] : memref<1x18x18x4xbf16, #tpu.memory_space<vmem>>, vector<1x16x16x4xbf16>
    %15 = vector.shape_cast %14 : vector<1x16x16x4xbf16> to vector<16x16x4xbf16>
    %c0_15 = arith.constant 0 : index
    %c1_16 = arith.constant 1 : index
    %c1_17 = arith.constant 1 : index
    %c0_18 = arith.constant 0 : index
    %16 = vector.load %arg3[%c0_15, %c1_16, %c1_17, %c0_18] : memref<1x18x18x4xbf16, #tpu.memory_space<vmem>>, vector<1x16x16x4xbf16>
    %17 = vector.shape_cast %16 : vector<1x16x16x4xbf16> to vector<16x16x4xbf16>
    %c0_19 = arith.constant 0 : index
    %c1_20 = arith.constant 1 : index
    %c2_21 = arith.constant 2 : index
    %c0_22 = arith.constant 0 : index
    %18 = vector.load %arg3[%c0_19, %c1_20, %c2_21, %c0_22] : memref<1x18x18x4xbf16, #tpu.memory_space<vmem>>, vector<1x16x16x4xbf16>
    %19 = vector.shape_cast %18 : vector<1x16x16x4xbf16> to vector<16x16x4xbf16>
    %20 = tpu.concatenate %15, %17, %19 in 2 : vector<16x16x4xbf16>, vector<16x16x4xbf16>, vector<16x16x4xbf16> -> vector<16x16x12xbf16>
    %21 = vector.shape_cast %20 : vector<16x16x12xbf16> to vector<256x12xbf16>
    %c1_23 = arith.constant 1 : index
    %c0_24 = arith.constant 0 : index
    %22 = arith.index_cast %1 : i32 to index
    %23 = vector.load %arg4[%c1_23, %c0_24, %22] : memref<3x12x128xbf16, #tpu.memory_space<vmem>>, vector<1x12x128xbf16>
    %24 = vector.shape_cast %23 : vector<1x12x128xbf16> to vector<12x128xbf16>
    %cst_25 = arith.constant dense<0.000000e+00> : vector<256x128xf32>
    %25 = tpu.matmul %21, %24, %cst_25 {dimension_numbers = #tpu.dot_dimension_numbers<[1], [0], [0], [1], [0, 0, 1, 1], [], []>} : vector<256x12xbf16>, vector<12x128xbf16>, vector<256x128xf32> -> vector<256x128xf32>
    %26 = arith.addf %13, %25 : vector<256x128xf32>
    %c0_26 = arith.constant 0 : index
    %c2_27 = arith.constant 2 : index
    %c0_28 = arith.constant 0 : index
    %c0_29 = arith.constant 0 : index
    %27 = vector.load %arg3[%c0_26, %c2_27, %c0_28, %c0_29] : memref<1x18x18x4xbf16, #tpu.memory_space<vmem>>, vector<1x16x16x4xbf16>
    %28 = vector.shape_cast %27 : vector<1x16x16x4xbf16> to vector<16x16x4xbf16>
    %c0_30 = arith.constant 0 : index
    %c2_31 = arith.constant 2 : index
    %c1_32 = arith.constant 1 : index
    %c0_33 = arith.constant 0 : index
    %29 = vector.load %arg3[%c0_30, %c2_31, %c1_32, %c0_33] : memref<1x18x18x4xbf16, #tpu.memory_space<vmem>>, vector<1x16x16x4xbf16>
    %30 = vector.shape_cast %29 : vector<1x16x16x4xbf16> to vector<16x16x4xbf16>
    %c0_34 = arith.constant 0 : index
    %c2_35 = arith.constant 2 : index
    %c2_36 = arith.constant 2 : index
    %c0_37 = arith.constant 0 : index
    %31 = vector.load %arg3[%c0_34, %c2_35, %c2_36, %c0_37] : memref<1x18x18x4xbf16, #tpu.memory_space<vmem>>, vector<1x16x16x4xbf16>
    %32 = vector.shape_cast %31 : vector<1x16x16x4xbf16> to vector<16x16x4xbf16>
    %33 = tpu.concatenate %28, %30, %32 in 2 : vector<16x16x4xbf16>, vector<16x16x4xbf16>, vector<16x16x4xbf16> -> vector<16x16x12xbf16>
    %34 = vector.shape_cast %33 : vector<16x16x12xbf16> to vector<256x12xbf16>
    %c2_38 = arith.constant 2 : index
    %c0_39 = arith.constant 0 : index
    %35 = arith.index_cast %1 : i32 to index
    %36 = vector.load %arg4[%c2_38, %c0_39, %35] : memref<3x12x128xbf16, #tpu.memory_space<vmem>>, vector<1x12x128xbf16>
    %37 = vector.shape_cast %36 : vector<1x12x128xbf16> to vector<12x128xbf16>
    %cst_40 = arith.constant dense<0.000000e+00> : vector<256x128xf32>
    %38 = tpu.matmul %34, %37, %cst_40 {dimension_numbers = #tpu.dot_dimension_numbers<[1], [0], [0], [1], [0, 0, 1, 1], [], []>} : vector<256x12xbf16>, vector<12x128xbf16>, vector<256x128xf32> -> vector<256x128xf32>
    %39 = arith.addf %26, %38 : vector<256x128xf32>
    %c0_41 = arith.constant 0 : index
    %c0_42 = arith.constant 0 : index
    %40 = vector.load %arg5[%c0_41, %c0_42] : memref<1x128xf32, #tpu.memory_space<vmem>>, vector<1x128xf32>
    %41 = vector.broadcast %40 : vector<1x128xf32> to vector<256x128xf32>
    %42 = arith.addf %39, %41 : vector<256x128xf32>
    %43 = vector.shape_cast %42 : vector<256x128xf32> to vector<1x256x128xf32>
    %c0_43 = arith.constant 0 : index
    %c0_44 = arith.constant 0 : index
    %c0_45 = arith.constant 0 : index
    %44 = vector.load %arg6[%c0_43, %c0_44, %c0_45] : memref<1x256x128xf32, #tpu.memory_space<vmem>>, vector<1x256x128xf32>
    tpu.vector_store %arg6[%c0_43, %c0_44, %c0_45], %43 {strides = array<i32>} : memref<1x256x128xf32, #tpu.memory_space<vmem>>, vector<1x256x128xf32>,
    return
  }
  func.func @transform_0(%arg0: i32, %arg1: i32, %arg2: i32) -> (i32, i32, i32, i32) {
    %c0_i32 = arith.constant 0 : i32
    %c0_i32_0 = arith.constant 0 : i32
    %c0_i32_1 = arith.constant 0 : i32
    %c0_i32_2 = arith.constant 0 : i32
    return %arg0, %c0_i32, %c0_i32_0, %c0_i32_1 : i32, i32, i32, i32
  }
  func.func @transform_1(%arg0: i32, %arg1: i32, %arg2: i32) -> (i32, i32, i32) {
    %c0_i32 = arith.constant 0 : i32
    %c0_i32_0 = arith.constant 0 : i32
    %c0_i32_1 = arith.constant 0 : i32
    %c0_i32_2 = arith.constant 0 : i32
    return %c0_i32, %c0_i32_0, %c0_i32_1 : i32, i32, i32
  }
  func.func @transform_2(%arg0: i32, %arg1: i32, %arg2: i32) -> (i32, i32) {
    %c0_i32 = arith.constant 0 : i32
    %c0_i32_0 = arith.constant 0 : i32
    return %c0_i32, %arg2 : i32, i32
  }
  func.func @transform_3(%arg0: i32, %arg1: i32, %arg2: i32) -> (i32, i32, i32) {
    %c0_i32 = arith.constant 0 : i32
    return %arg0, %arg1, %arg2 : i32, i32, i32
  }
}

</mosaic_0001>

<bundles_post_ra>
// kernel: default_conv_forward.1
= control target key start
LH: loop header
LB: loop body
LE: loop exit
PB: predicated region body
PF: predicated region fallthrough
CT: control target
= control target key end

     0   :  { %s3676_s12 = smov 0   ;;  %s3678_s13 = smov 0   ;;  %s4880_s0 = inlined_call_operand.vmem [shape: bf16[2,18,18,4], index: 0, kind: input, shape index: {}]   ;;  %s4881_s1 = inlined_call_operand.vmem [shape: bf16[3,12,128], index: 1, kind: input, shape index: {}]   ;;  %s4882_s2 = inlined_call_operand.vmem [shape: f32[1,128], index: 2, kind: input, shape index: {}]   ;;  %s4883_s3 = inlined_call_operand.vmem [shape: f32[2,256,128], index: 3, kind: output, shape index: {}]  }
   0x1   :  { %s3680_s14 = smov 0  }
   0x2 LB: > { %s32_s15 = sadd.s32 1, %s3648_s13  ;;  %p2898_p0 = scmp.ge.s32.totalorder %s3652_s14, 1  ;;  %s3652_s14 = sphi %s3680_s14, %s13_s14   ;;  %s3648_s13 = sphi %s3678_s13, %s4909_s13   ;;  %s3644_s12 = sphi %s3676_s12, %s4908_s12  }
   0x3   : > { %p34_p1 = scmp.ge.s32.totalorder %s32_s15, 2  ;;  %p168_p2 = scmp.lt.s32.totalorder %s3652_s14, 3 }
   0x5   : > { %s4911_s15 = smov (%p34_p1, %s32_s15), 0  ;;  %p169_p3 = pnand %p2898_p0, %p168_p2 }
   0x7   : > { %172 = sbr.rel (%p169_p3) target bundleno = 553 (0x229), region = 32 }
   0xe   : > { %p202_p4 = scmp.lt.s32.totalorder %s3644_s12, 1  ;;  %vm690_vm0 = vcmask 1046528   ;;  %vm417_vm1 = vsmask.f32 7424  ;;  %s3654_s20 = smov 8   ;;  %vm1495_vm2 = vcmask 1045504  }
   0xf   : > { %s3655_s21 = smov 4   ;;  %vm771_vm3 = vcmask 31744   ;;  %vm804_vm4 = vcmask 64512   ;;  %vm1462_vm5 = vcmask 97280  }
  0x10   : > { %s4913_s12 = smov (!%p202_p4, %s3644_s12), 1 }
  0x11   : > { %s3456_s16 = smul.u32 216, %s4913_s12  ;;  %s3232_s28 = sshll.u32 %s4913_s12, 8 }
  0x12   : > { %s4805_s6 = scalar_lea.vmem %s4883_s3, %s3232_s28 }
  0x13   : > { %s3700_s19 = scalar_lea.vmem %s4880_s0, %s3456_s16 }
  0x14   : > { %v228_v0 = vld [vmem:[%s3700_s19 + $0x10] sm:$0xf]  ;;  %v274_v1 = vld [vmem:[%s3700_s19 + $0xc] sm:$0xe]  ;;  %v226_v5 = vld [vmem:[%s3700_s19 + $0x4] sm:$0xf] }
  0x15   : > { %v3483_v2 = vld [vmem:[%s3700_s19 + $0x14] ss:$0 sps:$4 sm:$0x11]   ;;  %v2935_v3 = vcombine.low %v274_v1, %v228_v0  ;;  %v227_v4 = vld [vmem:[%s3700_s19 + $0xc] sm:$0xf] }
  0x16   : > { %v273_v6 = vld [vmem:[%s3700_s19] sm:$0xe]  ;;  %v695_v8 = vrot.slane %v3483_v2, 1  ;;  %v3486_v9 = vld [vmem:[%s3700_s19 + $0x8] ss:$0 sps:$4 sm:$0x11]   ;;  %v3717_v20 = vcombine.low %v227_v4, %v228_v0 }
  0x17   : > { %v694_v7 = vrot.slane %v2935_v3, 1  ;;  %v2934_v10 = vcombine.low %v273_v6, %v226_v5  ;;  %v438_v11 = vshll.u32 %v3483_v2, 16  ;;  %v225_v12 = vld [vmem:[%s3700_s19] sm:$0xf]  ;;  %v2950_v13 = vld [vmem:[%s3700_s19 + $0xc] sm:$0xf] }
  0x18   : > { %v2951_v14 = vld [vmem:[%s3700_s19 + $0x10] sm:$0xf]  ;;  %v692_v17 = vrot.slane %v3486_v9, 1  ;;  %v3713_v18 = vcombine.low %v225_v12, %v226_v5  ;;  %v2998_v19 = vld [vmem:[%s3700_s19 + $0xc] sm:$0xe]  ;;  %v426_v24 = vshll.u32 %v3486_v9, 16 }
  0x19   : > { %v696_v15 = vsel %vm690_vm0, %v694_v7, %v695_v8  ;;  %v691_v16 = vrot.slane %v2934_v10, 1  ;;  %v3719_v21 = vcombine.low %v2950_v13, %v2951_v14  ;;  %v3490_v22 = vld [vmem:[%s3700_s19 + $0x14] ss:$0 sps:$4 sm:$0x11]   ;;  %v3046_v23 = vcombine.low %v2998_v19, %v2951_v14  ;;  %v2952_v25 = vld [vmem:[%s3700_s19 + $0x18] sm:$0xf] }
  0x1a   : > { %741 = vrot.lane.b32.xlu0 %v696_v15, %s3654_s20  ;;  %v419_v27 = vshrl.u32 %v3713_v18, 16  ;;  %v421_v28 = vshll.u32 %v3713_v18, 16  ;;  %v2953_v29 = vld [vmem:[%s3700_s19 + $0x1c] sm:$0xf]  ;;  %v1309_v31 = vrot.slane %v3490_v22, 1  ;;  %v428_v32 = vrot.slane %v426_v24, 1 }
  0x1b   : > { %v693_v26 = vsel %vm690_vm0, %v691_v16, %v692_v17  ;;  %v1308_v30 = vrot.slane %v3046_v23, 1  ;;  %v2999_v33 = vld [vmem:[%s3700_s19 + $0x18] sm:$0xe]  ;;  %v3729_v34 = vcombine.low %v2952_v25, %v2953_v29  ;;  %v3493_v36 = vld [vmem:[%s3700_s19 + $0x20] ss:$0 sps:$4 sm:$0x11]  }
  0x1c   : > { %739 = vrot.lane.b32.xlu1 %v693_v26, %s3654_s20  ;;  %v423_v35 = vrot.slane %v421_v28, 1  ;;  %v3047_v37 = vcombine.low %v2999_v33, %v2953_v29  ;;  %v1037_v38 = vshrl.u32 %v3719_v21, 16  ;;  %v1039_v39 = vshll.u32 %v3719_v21, 16  ;;  %v2954_v44 = vld [vmem:[%s3700_s19 + $0x24] sm:$0xf] }
  0x1d   : > { %v1310_v40 = vsel %vm690_vm0, %v1308_v30, %v1309_v31  ;;  %v1044_v41 = vshll.u32 %v3490_v22, 16  ;;  %v431_v42 = vshrl.u32 %v3717_v20, 16  ;;  %v433_v43 = vshll.u32 %v3717_v20, 16  ;;  %v3739_v49 = vld [vmem:[%s3700_s19 + $0x28] sm:$0xf] }
  0x1e   : > { %v424_v45 = vor.u32 %v423_v35, %v419_v27  ;;  %v1311_v46 = vrot.slane %v3047_v37, 1  ;;  %v1312_v47 = vrot.slane %v3493_v36, 1  ;;  %v1041_v48 = vrot.slane %v1039_v39, 1  ;;  %v3747_v58 = vld [vmem:[%s3700_s19 + $0x2c] ss:$0 sps:$4 sm:$0x11]  }
  0x1f   : > { %v1046_v50 = vrot.slane %v1044_v41, 1  ;;  %v435_v51 = vrot.slane %v433_v43, 1  ;;  %v440_v52 = vrot.slane %v438_v11, 1  ;;  %v1049_v53 = vshrl.u32 %v3729_v34, 16  ;;  %v229_v59 = vld [vmem:[%s3700_s19 + $0x18] sm:$0xf] }
  0x20   : > { %1356 = vrot.lane.b32.xlu1 %v1310_v40, %s3654_s20  ;;  %v429_v54 = vsel %vm417_vm1, %v424_v45, %v428_v32  ;;  %v1313_v55 = vsel %vm690_vm0, %v1311_v46, %v1312_v47  ;;  %v1042_v56 = vor.u32 %v1041_v48, %v1037_v38  ;;  %v1051_v57 = vshll.u32 %v3729_v34, 16  ;;  %v230_v63 = vld [vmem:[%s3700_s19 + $0x1c] sm:$0xf]  ;;  %v3498_v4 = vld [vmem:[%s3700_s19 + $0x20] ss:$0 sps:$4 sm:$0x11]  }
  0x21   : > { %610 = vrot.lane.b32.xlu0 %v429_v54, %s3655_s21  ;;  %v436_v60 = vor.u32 %v435_v51, %v431_v42  ;;  %v1056_v61 = vshll.u32 %v3493_v36, 16  ;;  %v3752_v62 = vcombine.low %v2954_v44, %v3739_v49  ;;  %v1068_v2 = vshll.u32 %v3747_v58, 16  ;;  %v275_v8 = vld [vmem:[%s3700_s19 + $0x18] sm:$0xe]  ;;  %v231_v13 = vld [vmem:[%s3700_s19 + $0x24] sm:$0xf] }
  0x22   : > { %v1047_v0 = vsel %vm417_vm1, %v1042_v56, %v1046_v50  ;;  %v1053_v1 = vrot.slane %v1051_v57, 1  ;;  %v3757_v3 = vcombine.low %v229_v59, %v230_v63  ;;  %v450_v16 = vshll.u32 %v3498_v4, 16  ;;  %v232_v19 = vld [vmem:[%s3700_s19 + $0x28] sm:$0xf]  ;;  %v3000_v30 = vld [vmem:[%s3700_s19 + $0x24] sm:$0xe] }
  0x23   : > { %v1058_v5 = vrot.slane %v1056_v61, 1  ;;  %v1061_v6 = vshrl.u32 %v3752_v62, 16  ;;  %v1063_v7 = vshll.u32 %v3752_v62, 16  ;;  %v441_v9 = vsel %vm417_vm1, %v436_v60, %v440_v52  ;;  %v3774_v25 = vld [vmem:[%s3700_s19 + $0x2c] ss:$0 sps:$4 sm:$0x11]  }
  0x24   : > { %1358 = vrot.lane.b32.xlu1 %v1313_v55, %s3654_s20  ;;  %v1054_v10 = vor.u32 %v1053_v1, %v1049_v53  ;;  %v443_v11 = vshrl.u32 %v3757_v3, 16  ;;  %v445_v12 = vshll.u32 %v3757_v3, 16  ;;  %v1070_v15 = vrot.slane %v1068_v2, 1  ;;  %v2956_v36 = vld [vmem:[%s3700_s19 + $0x30] sm:$0xf] }
  0x25   : > { %1228 = vrot.lane.b32.xlu0 %v1047_v0, %s3655_s21  ;;  %v1065_v14 = vrot.slane %v1063_v7, 1  ;;  %v2936_v17 = vcombine.low %v275_v8, %v230_v63  ;;  %v3771_v24 = vcombine.low %v231_v13, %v232_v19  ;;  %v452_v27 = vrot.slane %v450_v16, 1  ;;  %v2957_v39 = vld [vmem:[%s3700_s19 + $0x34] sm:$0xf]  ;;  %v3001_v40 = vld [vmem:[%s3700_s19 + $0x30] sm:$0xe] }
  0x26   : > { %v1059_v22 = vsel %vm417_vm1, %v1054_v10, %v1058_v5  ;;  %v447_v23 = vrot.slane %v445_v12, 1  ;;  %v698_v29 = vrot.slane %v3498_v4, 1  ;;  %v462_v35 = vshll.u32 %v3774_v25, 16  ;;  %v3504_v45 = vld [vmem:[%s3700_s19 + $0x38] ss:$0 sps:$4 sm:$0x11]  }
  0x27   : > { %v1066_v26 = vor.u32 %v1065_v14, %v1061_v6  ;;  %v697_v28 = vrot.slane %v2936_v17, 1  ;;  %v455_v32 = vshrl.u32 %v3771_v24, 16  ;;  %v457_v33 = vshll.u32 %v3771_v24, 16  ;;  %v2958_v51 = vld [vmem:[%s3700_s19 + $0x3c] sm:$0xf] }
  0x28   : > { %612 = vrot.lane.b32.xlu1 %v441_v9, %s3655_s21  ;;  %v448_v31 = vor.u32 %v447_v23, %v443_v11  ;;  %v3048_v38 = vcombine.low %v3000_v30, %v3739_v49  ;;  %v464_v43 = vrot.slane %v462_v35, 1  ;;  %v3788_v44 = vcombine.low %v2956_v36, %v2957_v39  ;;  %v276_v49 = vld [vmem:[%s3700_s19 + $0x24] sm:$0xe]  ;;  %v2959_v56 = vld [vmem:[%s3700_s19 + $0x40] sm:$0xf] }
  0x29   : > { %1230 = vrot.lane.b32.xlu0 %v1059_v22, %s3655_s21  ;;  %v1071_v37 = vsel %vm417_vm1, %v1066_v26, %v1070_v15  ;;  %v459_v42 = vrot.slane %v457_v33, 1  ;;  %v699_v46 = vsel %vm690_vm0, %v697_v28, %v698_v29  ;;  %v1315_v48 = vrot.slane %v3747_v58, 1  ;;  %v233_v58 = vld [vmem:[%s3700_s19 + $0x30] sm:$0xf]  ;;  %v234_v7 = vld [vmem:[%s3700_s19 + $0x34] sm:$0xf] }
  0x2a   : > { %v453_v41 = vsel %vm417_vm1, %v448_v31, %v452_v27  ;;  %v1314_v47 = vrot.slane %v3048_v38, 1  ;;  %v3049_v50 = vcombine.low %v3001_v40, %v2957_v39  ;;  %v1073_v53 = vshrl.u32 %v3788_v44, 16  ;;  %v3806_v2 = vld [vmem:[%s3700_s19 + $0x44] ss:$0 sps:$4 sm:$0x11]  }
  0x2b   : > { %v460_v52 = vor.u32 %v459_v42, %v455_v32  ;;  %v1075_v54 = vshll.u32 %v3788_v44, 16  ;;  %v1080_v55 = vshll.u32 %v3504_v45, 16  ;;  %v2937_v59 = vcombine.low %v276_v49, %v232_v19  ;;  %v3510_v12 = vld [vmem:[%s3700_s19 + $0x38] ss:$0 sps:$4 sm:$0x11]  }
  0x2c   : > { %1232 = vrot.lane.b32.xlu1 %v1071_v37, %s3655_s21  ;;  %v1317_v57 = vrot.slane %v3049_v50, 1  ;;  %v701_v60 = vrot.slane %v3774_v25, 1  ;;  %v3803_v1 = vcombine.low %v2958_v51, %v2959_v56  ;;  %v1316_v4 = vsel %vm690_vm0, %v1314_v47, %v1315_v48  ;;  %v277_v14 = vld [vmem:[%s3700_s19 + $0x30] sm:$0xe]  ;;  %v235_v15 = vld [vmem:[%s3700_s19 + $0x3c] sm:$0xf] }
  0x2d   : > { %614 = vrot.lane.b32.xlu0 %v453_v41, %s3655_s21  ;;  %v465_v61 = vsel %vm417_vm1, %v460_v52, %v464_v43  ;;  %v1077_v63 = vrot.slane %v1075_v54, 1  ;;  %v1082_v0 = vrot.slane %v1080_v55, 1  ;;  %v1318_v5 = vrot.slane %v3504_v45, 1  ;;  %v3821_v16 = vld [vmem:[%s3700_s19 + $0x40] sm:$0xf] }
  0x2e   : > { %v700_v6 = vrot.slane %v2937_v59, 1  ;;  %v1085_v9 = vshrl.u32 %v3803_v1, 16  ;;  %v1087_v10 = vshll.u32 %v3803_v1, 16  ;;  %v1092_v11 = vshll.u32 %v3806_v2, 16  ;;  %v3002_v32 = vld [vmem:[%s3700_s19 + $0x3c] sm:$0xe] }
  0x2f   : > { %v1078_v8 = vor.u32 %v1077_v63, %v1073_v53  ;;  %v3816_v13 = vcombine.low %v233_v58, %v234_v7  ;;  %v474_v22 = vshll.u32 %v3510_v12, 16  ;;  %v2938_v26 = vcombine.low %v277_v14, %v234_v7  ;;  %v3828_v27 = vld [vmem:[%s3700_s19 + $0x44] ss:$0 sps:$4 sm:$0x11]   ;;  %v2960_v33 = vld [vmem:[%s3700_s19 + $0x48] sm:$0xf] }
  0x30   : > { %743 = vrot.lane.b32.xlu1 %v699_v46, %s3654_s20  ;;  %v1089_v19 = vrot.slane %v1087_v10, 1  ;;  %v1319_v28 = vsel %vm690_vm0, %v1317_v57, %v1318_v5  ;;  %v1094_v30 = vrot.slane %v1092_v11, 1  ;;  %v3832_v31 = vcombine.low %v235_v15, %v3821_v16  ;;  %v2961_v39 = vld [vmem:[%s3700_s19 + $0x4c] sm:$0xf]  ;;  %v3003_v54 = vld [vmem:[%s3700_s19 + $0x48] sm:$0xe] }
  0x31   : > { %616 = vrot.lane.b32.xlu0 %v465_v61, %s3655_s21  ;;  %v1083_v17 = vsel %vm417_vm1, %v1078_v8, %v1082_v0  ;;  %v467_v23 = vshrl.u32 %v3816_v13, 16  ;;  %v469_v25 = vshll.u32 %v3816_v13, 16  ;;  %v702_v35 = vsel %vm690_vm0, %v700_v6, %v701_v60  ;;  %v3516_v50 = vld [vmem:[%s3700_s19 + $0x50] ss:$0 sps:$4 sm:$0x11]  }
  0x32   : > { %v1090_v29 = vor.u32 %v1089_v19, %v1085_v9  ;;  %v486_v37 = vshll.u32 %v3828_v27, 16  ;;  %v3050_v38 = vcombine.low %v3002_v32, %v2959_v56  ;;  %v476_v40 = vrot.slane %v474_v22, 1  ;;  %v2962_v57 = vld [vmem:[%s3700_s19 + $0x54] sm:$0xf]  ;;  %v3854_v59 = vld [vmem:[%s3700_s19 + $0x58] sm:$0xf] }
  0x33   : > { %v471_v36 = vrot.slane %v469_v25, 1  ;;  %v479_v41 = vshrl.u32 %v3832_v31, 16  ;;  %v481_v42 = vshll.u32 %v3832_v31, 16  ;;  %v3842_v43 = vcombine.low %v2960_v33, %v2961_v39  ;;  %v237_v0 = vld [vmem:[%s3700_s19 + $0x48] sm:$0xf] }
  0x34   : > { %1360 = vrot.lane.b32.xlu1 %v1316_v4, %s3654_s20  ;;  %v703_v46 = vrot.slane %v2938_v26, 1  ;;  %v704_v47 = vrot.slane %v3510_v12, 1  ;;  %v1321_v48 = vrot.slane %v3806_v2, 1  ;;  %v1095_v49 = vsel %vm417_vm1, %v1090_v29, %v1094_v30  ;;  %v278_v4 = vld [vmem:[%s3700_s19 + $0x3c] sm:$0xe] }
  0x35   : > { %1234 = vrot.lane.b32.xlu0 %v1083_v17, %s3655_s21  ;;  %v472_v45 = vor.u32 %v471_v36, %v467_v23  ;;  %v483_v51 = vrot.slane %v481_v42, 1  ;;  %v488_v52 = vrot.slane %v486_v37, 1  ;;  %v1099_v53 = vshll.u32 %v3842_v43, 16  ;;  %v3864_v6 = vld [vmem:[%s3700_s19 + $0x5c] ss:$0 sps:$4 sm:$0x11]  }
  0x36   : > { %v1320_v55 = vrot.slane %v3050_v38, 1  ;;  %v1097_v56 = vshrl.u32 %v3842_v43, 16  ;;  %v1104_v63 = vshll.u32 %v3516_v50, 16  ;;  %v3051_v2 = vcombine.low %v3003_v54, %v2961_v39  ;;  %v238_v8 = vld [vmem:[%s3700_s19 + $0x4c] sm:$0xf] }
  0x37   : > { %v477_v60 = vsel %vm417_vm1, %v472_v45, %v476_v40  ;;  %v484_v58 = vor.u32 %v483_v51, %v479_v41  ;;  %v1101_v61 = vrot.slane %v1099_v53, 1  ;;  %v3861_v5 = vcombine.low %v2962_v57, %v3854_v59  ;;  %v3874_v14 = vld [vmem:[%s3700_s19 + $0x50] ss:$0 sps:$4 sm:$0x11]   ;;  %v239_v23 = vld [vmem:[%s3700_s19 + $0x54] sm:$0xf] }
  0x38   : > { %1362 = vrot.lane.b32.xlu1 %v1319_v28, %s3654_s20  ;;  %v705_v7 = vsel %vm690_vm0, %v703_v46, %v704_v47  ;;  %v1322_v9 = vsel %vm690_vm0, %v1320_v55, %v1321_v48  ;;  %v1324_v10 = vrot.slane %v3516_v50, 1  ;;  %v3871_v12 = vcombine.low %v237_v0, %v238_v8  ;;  %v3880_v25 = vld [vmem:[%s3700_s19 + $0x58] sm:$0xf]  ;;  %v3894_v38 = vld [vmem:[%s3700_s19 + $0x5c] ss:$0 sps:$4 sm:$0x11]  }
  0x39   : > { %745 = vrot.lane.b32.xlu0 %v702_v35, %s3654_s20  ;;  %v1111_v11 = vshll.u32 %v3861_v5, 16  ;;  %v489_v15 = vsel %vm417_vm1, %v484_v58, %v488_v52  ;;  %v1102_v17 = vor.u32 %v1101_v61, %v1097_v56  ;;  %v1106_v19 = vrot.slane %v1104_v63, 1  ;;  %v2964_v39 = vld [vmem:[%s3700_s19 + $0x60] sm:$0xf]  ;;  %v2965_v46 = vld [vmem:[%s3700_s19 + $0x64] sm:$0xf] }
  0x3a   : > { %v2939_v22 = vcombine.low %v278_v4, %v3821_v16  ;;  %v1323_v26 = vrot.slane %v3051_v2, 1  ;;  %v1109_v28 = vshrl.u32 %v3861_v5, 16  ;;  %v1116_v29 = vshll.u32 %v3864_v6, 16  ;;  %v279_v16 = vld [vmem:[%s3700_s19 + $0x48] sm:$0xe] }
  0x3b   : > { %v493_v30 = vshll.u32 %v3871_v12, 16  ;;  %v1113_v32 = vrot.slane %v1111_v11, 1  ;;  %v491_v33 = vshrl.u32 %v3871_v12, 16  ;;  %v498_v35 = vshll.u32 %v3874_v14, 16  ;;  %v3004_v51 = vld [vmem:[%s3700_s19 + $0x54] sm:$0xe] }
  0x3c   : > { %1236 = vrot.lane.b32.xlu1 %v1095_v49, %s3655_s21  ;;  %v3890_v36 = vcombine.low %v239_v23, %v3880_v25  ;;  %v1107_v40 = vsel %vm417_vm1, %v1102_v17, %v1106_v19  ;;  %v706_v41 = vrot.slane %v2939_v22, 1  ;;  %v707_v42 = vrot.slane %v3828_v27, 1  ;;  %v3907_v53 = vld [vmem:[%s3700_s19 + $0x68] ss:$0 sps:$4 sm:$0x11]  }
  0x3d   : > { %618 = vrot.lane.b32.xlu0 %v477_v60, %s3655_s21  ;;  %v495_v37 = vrot.slane %v493_v30, 1  ;;  %v2940_v47 = vcombine.low %v279_v16, %v238_v8  ;;  %v1325_v48 = vsel %vm690_vm0, %v1323_v26, %v1324_v10  ;;  %v1114_v50 = vor.u32 %v1113_v32, %v1109_v28  ;;  %v3098_v57 = vld [vmem:[%s3700_s19 + $0x18] sm:$0xf]  ;;  %v3916_v63 = vld [vmem:[%s3700_s19 + $0x1c] sm:$0xf] }
  0x3e   : > { %v505_v45 = vshll.u32 %v3890_v36, 16  ;;  %v1118_v49 = vrot.slane %v1116_v29, 1  ;;  %v3904_v52 = vcombine.low %v2964_v39, %v2965_v46  ;;  %v500_v54 = vrot.slane %v498_v35, 1  ;;  %v3005_v4 = vld [vmem:[%s3700_s19 + $0x60] sm:$0xe] }
  0x3f   : > { %v496_v27 = vor.u32 %v495_v37, %v491_v33  ;;  %v503_v55 = vshrl.u32 %v3890_v36, 16  ;;  %v510_v56 = vshll.u32 %v3894_v38, 16  ;;  %v708_v60 = vsel %vm690_vm0, %v706_v41, %v707_v42  ;;  %v2966_v11 = vld [vmem:[%s3700_s19 + $0x6c] sm:$0xf]  ;;  %v280_v22 = vld [vmem:[%s3700_s19 + $0x54] sm:$0xe] }
  0x40   : > { %747 = vrot.lane.b32.xlu1 %v705_v7, %s3654_s20  ;;  %v507_v58 = vrot.slane %v505_v45, 1  ;;  %v1123_v61 = vshll.u32 %v3904_v52, 16  ;;  %v709_v0 = vrot.slane %v2940_v47, 1  ;;  %v710_v2 = vrot.slane %v3874_v14, 1  ;;  %v2968_v35 = vld [vmem:[%s3700_s19 + $0x78] sm:$0xf] }
  0x41   : > { %620 = vrot.lane.b32.xlu0 %v489_v15, %s3655_s21  ;;  %v1119_v7 = vsel %vm417_vm1, %v1114_v50, %v1118_v49  ;;  %v3052_v8 = vcombine.low %v3004_v51, %v3854_v59  ;;  %v3925_v10 = vcombine.low %v3098_v57, %v3916_v63  ;;  %v3929_v15 = vld [vmem:[%s3700_s19 + $0x70] sm:$0xf]  ;;  %v501_v14 = vsel %vm417_vm1, %v496_v27, %v500_v54  ;;  %v3940_v30 = vld [vmem:[%s3700_s19 + $0x20] ss:$0 sps:$4 sm:$0x11]  }
  0x42   : > { %v512_v17 = vrot.slane %v510_v56, 1  ;;  %v1327_v19 = vrot.slane %v3864_v6, 1  ;;  %v3936_v59 = vcombine.low %v2966_v11, %v3929_v15  ;;  %v508_v23 = vor.u32 %v507_v58, %v503_v55  ;;  %v3945_v33 = vld [vmem:[%s3700_s19 + $0x74] ss:$0 sps:$4 sm:$0x11]  }
  0x43   : > { %v1121_v26 = vshrl.u32 %v3904_v52, 16  ;;  %v1125_v28 = vrot.slane %v1123_v61, 1  ;;  %v3053_v29 = vcombine.low %v3005_v4, %v2965_v46  ;;  %v2057_v32 = vshll.u32 %v3925_v10, 16  ;;  %v3950_v39 = vld [vmem:[%s3700_s19 + $0x7c] sm:$0xf] }
  0x44   : > { %1364 = vrot.lane.b32.xlu1 %v1322_v9, %s3654_s20  ;;  %v1128_v9 = vshll.u32 %v3907_v53, 16  ;;  %v711_v6 = vsel %vm690_vm0, %v709_v0, %v710_v2  ;;  %v1326_v16 = vrot.slane %v3052_v8, 1  ;;  %v2941_v41 = vcombine.low %v280_v22, %v3880_v25  ;;  %v3100_v49 = vld [vmem:[%s3700_s19 + $0x24] sm:$0xf]  ;;  %v3006_v27 = vld [vmem:[%s3700_s19 + $0x6c] sm:$0xe] }
  0x45   : > { %1238 = vrot.lane.b32.xlu0 %v1107_v40, %s3655_s21  ;;  %v1330_v40 = vrot.slane %v3907_v53, 1  ;;  %v1135_v42 = vshll.u32 %v3936_v59, 16  ;;  %v3957_v45 = vcombine.low %v2968_v35, %v3950_v39  ;;  %v513_v46 = vsel %vm417_vm1, %v508_v23, %v512_v17  ;;  %v3966_v54 = vld [vmem:[%s3700_s19 + $0x28] sm:$0xf]  ;;  %v3146_v11 = vld [vmem:[%s3700_s19 + $0x18] sm:$0xe] }
  0x46   : > { %v1130_v37 = vrot.slane %v1128_v9, 1  ;;  %v1126_v47 = vor.u32 %v1125_v28, %v1121_v26  ;;  %v2062_v50 = vshll.u32 %v3940_v30, 16  ;;  %v2055_v51 = vshrl.u32 %v3925_v10, 16  ;;  %v3971_v56 = vld [vmem:[%s3700_s19 + $0x80] ss:$0 sps:$4 sm:$0x11]  }
  0x47   : > { %v2059_v53 = vrot.slane %v2057_v32, 1  ;;  %v1328_v25 = vsel %vm690_vm0, %v1326_v16, %v1327_v19  ;;  %v1140_v55 = vshll.u32 %v3945_v33, 16  ;;  %v1133_v57 = vshrl.u32 %v3936_v59, 16  ;;  %v3988_v23 = vld [vmem:[%s3700_s19 + $0x2c] ss:$0 sps:$4 sm:$0x11]  }
  0x48   : > { %1366 = vrot.lane.b32.xlu1 %v1325_v48, %s3654_s20  ;;  %v1329_v48 = vrot.slane %v3053_v29, 1  ;;  %v1147_v58 = vshll.u32 %v3957_v45, 16  ;;  %v3977_v61 = vcombine.low %v3100_v49, %v3966_v54  ;;  %v1131_v0 = vsel %vm417_vm1, %v1126_v47, %v1130_v37  ;;  %v3102_v29 = vld [vmem:[%s3700_s19 + $0x30] sm:$0xf]  ;;  %v3994_v32 = vld [vmem:[%s3700_s19 + $0x34] sm:$0xf] }
  0x49   : > { %749 = vrot.lane.b32.xlu0 %v708_v60, %s3654_s20  ;;  %v1137_v60 = vrot.slane %v1135_v42, 1  ;;  %v712_v2 = vrot.slane %v2941_v41, 1  ;;  %v713_v4 = vrot.slane %v3894_v38, 1  ;;  %v2064_v8 = vrot.slane %v2062_v50, 1  ;;  %v2970_v35 = vld [vmem:[%s3700_s19 + $0x84] sm:$0xf] }
  0x4a   : > { %v3054_v9 = vcombine.low %v3006_v27, %v3929_v15  ;;  %v1142_v17 = vrot.slane %v1140_v55, 1  ;;  %v1145_v19 = vshrl.u32 %v3957_v45, 16  ;;  %v1152_v22 = vshll.u32 %v3971_v56, 16  ;;  %v3147_v37 = vld [vmem:[%s3700_s19 + $0x24] sm:$0xe] }
  0x4b   : > { %v1138_v38 = vor.u32 %v1137_v60, %v1133_v57  ;;  %v1149_v26 = vrot.slane %v1147_v58, 1  ;;  %v2069_v28 = vshll.u32 %v3977_v61, 16  ;;  %v714_v15 = vsel %vm690_vm0, %v712_v2, %v713_v4  ;;  %v3007_v50 = vld [vmem:[%s3700_s19 + $0x78] sm:$0xe]  ;;  %v2972_v60 = vld [vmem:[%s3700_s19 + $0x90] sm:$0xf] }
  0x4c   : > { %1240 = vrot.lane.b32.xlu1 %v1119_v7, %s3655_s21  ;;  %v1331_v7 = vsel %vm690_vm0, %v1329_v48, %v1330_v40  ;;  %v3194_v16 = vcombine.low %v3146_v11, %v3916_v63  ;;  %v1332_v41 = vrot.slane %v3054_v9, 1  ;;  %v1333_v42 = vrot.slane %v3945_v33, 1  ;;  %v4025_v58 = vld [vmem:[%s3700_s19 + $0x94] sm:$0xf] }
  0x4d   : > { %622 = vrot.lane.b32.xlu0 %v501_v14, %s3655_s21  ;;  %v2060_v14 = vor.u32 %v2059_v53, %v2055_v51  ;;  %v1143_v47 = vsel %vm417_vm1, %v1138_v38, %v1142_v17  ;;  %v1154_v48 = vrot.slane %v1152_v22, 1  ;;  %v2074_v63 = vshll.u32 %v3988_v23, 16  ;;  %v4030_v4 = vld [vmem:[%s3700_s19 + $0x8c] ss:$0 sps:$4 sm:$0x11]  }
  0x4e   : > { %v1150_v51 = vor.u32 %v1149_v26, %v1145_v19  ;;  %v2067_v33 = vshrl.u32 %v3977_v61, 16  ;;  %v2071_v53 = vrot.slane %v2069_v28, 1  ;;  %v3195_v27 = vcombine.low %v3147_v37, %v3966_v54  ;;  %v3104_v38 = vld [vmem:[%s3700_s19 + $0x3c] sm:$0xf] }
  0x4f   : > { %v2065_v40 = vsel %vm417_vm1, %v2060_v14, %v2064_v8  ;;  %v2326_v55 = vrot.slane %v3194_v16, 1  ;;  %v2327_v57 = vrot.slane %v3940_v30, 1  ;;  %v2076_v54 = vrot.slane %v2074_v63, 1  ;;  %v4054_v37 = vld [vmem:[%s3700_s19 + $0x98] ss:$0 sps:$4 sm:$0x11]  }
  0x50   : > { %751 = vrot.lane.b32.xlu1 %v711_v6, %s3654_s20  ;;  %v3999_v6 = vld [vmem:[%s3700_s19 + $0x88] sm:$0xf]  ;;  %v3055_v8 = vcombine.low %v3007_v50, %v3950_v39  ;;  %v1155_v9 = vsel %vm417_vm1, %v1150_v51, %v1154_v48  ;;  %v2072_v11 = vor.u32 %v2071_v53, %v2067_v33  ;;  %v2329_v14 = vrot.slane %v3195_v27, 1  ;;  %v4067_v27 = vld [vmem:[%s3700_s19 + $0x4c] sm:$0xf] }
  0x51   : > { %624 = vrot.lane.b32.xlu0 %v513_v46, %s3655_s21  ;;  %v4007_v46 = vcombine.low %v3102_v29, %v3994_v32  ;;  %v4014_v49 = vcombine.low %v2970_v35, %v3999_v6  ;;  %v4038_v17 = vcombine.low %v2972_v60, %v4025_v58  ;;  %v2328_v39 = vsel %vm690_vm0, %v2326_v55, %v2327_v57  ;;  %v3008_v29 = vld [vmem:[%s3700_s19 + $0x84] sm:$0xe]  ;;  %v3106_v53 = vld [vmem:[%s3700_s19 + $0x48] sm:$0xf] }
  0x52   : > { %v1164_v28 = vshll.u32 %v4030_v4, 16  ;;  %v3056_v33 = vcombine.low %v3008_v29, %v3999_v6  ;;  %v1176_v57 = vshll.u32 %v4054_v37, 16  ;;  %v4072_v60 = vld [vmem:[%s3700_s19 + $0x44] ss:$0 sps:$4 sm:$0x11]   ;;  %v4079_v6 = vcombine.low %v3106_v53, %v4067_v27 }
  0x53   : > { %v2081_v2 = vshll.u32 %v4007_v46, 16  ;;  %v1159_v30 = vshll.u32 %v4014_v49, 16  ;;  %v2079_v19 = vshrl.u32 %v4007_v46, 16  ;;  %v1157_v35 = vshrl.u32 %v4014_v49, 16 }
  0x54   : > { %1368 = vrot.lane.b32.xlu1 %v1328_v25, %s3654_s20  ;;  %v4019_v25 = vld [vmem:[%s3700_s19 + $0x38] ss:$0 sps:$4 sm:$0x11]   ;;  %v1166_v51 = vrot.slane %v1164_v28, 1  ;;  %v3009_v28 = vld [vmem:[%s3700_s19 + $0x90] sm:$0xe] }
  0x55   : > { %1242 = vrot.lane.b32.xlu0 %v1131_v0, %s3655_s21  ;;  %v1334_v0 = vsel %vm690_vm0, %v1332_v41, %v1333_v42  ;;  %v2086_v22 = vshll.u32 %v4019_v25, 16  ;;  %v2083_v26 = vrot.slane %v2081_v2, 1  ;;  %v1161_v16 = vrot.slane %v1159_v30, 1  ;;  %v4083_v30 = vld [vmem:[%s3700_s19 + $0xa0] sm:$0xf] }
  0x56   : > { %v1335_v41 = vrot.slane %v3055_v8, 1  ;;  %v1171_v42 = vshll.u32 %v4038_v17, 16  ;;  %v1169_v2 = vshrl.u32 %v4038_v17, 16  ;;  %v2974_v8 = vld [vmem:[%s3700_s19 + $0x9c] sm:$0xf] }
  0x57   : > { %v2084_v63 = vor.u32 %v2083_v26, %v2079_v19  ;;  %v2088_v50 = vrot.slane %v2086_v22, 1  ;;  %v1162_v55 = vor.u32 %v1161_v16, %v1157_v35  ;;  %v3149_v22 = vld [vmem:[%s3700_s19 + $0x3c] sm:$0xe]  ;;  %v2098_v26 = vshll.u32 %v4072_v60, 16 }
  0x58   : > { %1370 = vrot.lane.b32.xlu1 %v1331_v7, %s3654_s20  ;;  %v2330_v7 = vrot.slane %v3988_v23, 1  ;;  %v4045_v23 = vld [vmem:[%s3700_s19 + $0x40] sm:$0xf]  ;;  %v4095_v16 = vld [vmem:[%s3700_s19 + $0x50] ss:$0 sps:$4 sm:$0x11]  }
  0x59   : > { %753 = vrot.lane.b32.xlu0 %v714_v15, %s3654_s20  ;;  %v1336_v15 = vrot.slane %v3971_v56, 1  ;;  %v3148_v56 = vld [vmem:[%s3700_s19 + $0x30] sm:$0xe] }
  0x5a   : > { %v2331_v48 = vsel %vm690_vm0, %v2329_v14, %v2330_v7  ;;  %v1339_v14 = vrot.slane %v4030_v4, 1  ;;  %v3196_v19 = vcombine.low %v3148_v56, %v3994_v32  ;;  %v4098_v4 = vcombine.low %v2974_v8, %v4083_v30 }
  0x5b   : > { %v2105_v32 = vshll.u32 %v4079_v6, 16  ;;  %v2333_v56 = vrot.slane %v4019_v25, 1  ;;  %v3108_v25 = vld [vmem:[%s3700_s19 + $0x54] sm:$0xf] }
  0x5c   : > { %2246 = vrot.lane.b32.xlu1 %v2065_v40, %s3655_s21  ;;  %v2077_v40 = vsel %vm417_vm1, %v2072_v11, %v2076_v54  ;;  %v1173_v54 = vrot.slane %v1171_v42, 1  ;;  %v1338_v11 = vrot.slane %v3056_v33, 1  ;;  %v4112_v33 = vld [vmem:[%s3700_s19 + $0xa4] ss:$0 sps:$4 sm:$0x11]  }
  0x5d   : > { %1244 = vrot.lane.b32.xlu0 %v1143_v47, %s3655_s21  ;;  %v4059_v47 = vcombine.low %v3104_v38, %v4045_v23  ;;  %v1167_v38 = vsel %vm417_vm1, %v1162_v55, %v1166_v51  ;;  %v3057_v51 = vcombine.low %v3009_v28, %v4025_v58  ;;  %v2110_v58 = vshll.u32 %v4095_v16, 16 }
  0x5e   : > { %v1174_v29 = vor.u32 %v1173_v54, %v1169_v2  ;;  %v1340_v42 = vsel %vm690_vm0, %v1338_v11, %v1339_v14  ;;  %v4121_v2 = vld [vmem:[%s3700_s19 + $0x58] sm:$0xf]  ;;  %v2107_v54 = vrot.slane %v2105_v32, 1  ;;  %v3010_v11 = vld [vmem:[%s3700_s19 + $0x9c] sm:$0xe] }
  0x5f   : > { %v2093_v7 = vshll.u32 %v4059_v47, 16  ;;  %v1341_v14 = vrot.slane %v3057_v51, 1  ;;  %v3150_v32 = vld [vmem:[%s3700_s19 + $0x48] sm:$0xe] }
  0x60   : > { %1372 = vrot.lane.b32.xlu1 %v1334_v0, %s3654_s20  ;;  %v1337_v0 = vsel %vm690_vm0, %v1335_v41, %v1336_v15  ;;  %v2091_v15 = vshrl.u32 %v4059_v47, 16  ;;  %v4104_v41 = vld [vmem:[%s3700_s19 + $0xac] sm:$0xf] }
  0x61   : > { %1246 = vrot.lane.b32.xlu0 %v1155_v9, %s3655_s21  ;;  %v2089_v9 = vsel %vm417_vm1, %v2084_v63, %v2088_v50  ;;  %v2095_v35 = vrot.slane %v2093_v7, 1  ;;  %v3197_v63 = vcombine.low %v3149_v22, %v4045_v23  ;;  %v2100_v50 = vrot.slane %v2098_v26, 1 }
  0x62   : > { %v2103_v23 = vshrl.u32 %v4079_v6, 16  ;;  %v1188_v22 = vshll.u32 %v4112_v33, 16 }
  0x63   : > { %v2096_v55 = vor.u32 %v2095_v35, %v2091_v15  ;;  %v2335_v8 = vrot.slane %v3197_v63, 1  ;;  %v2112_v15 = vrot.slane %v2110_v58, 1  ;;  %v3058_v35 = vcombine.low %v3010_v11, %v4083_v30  ;;  %v3110_v63 = vld [vmem:[%s3700_s19 + $0x60] sm:$0xf]  ;;  %v4155_v30 = vld [vmem:[%s3700_s19 + $0x64] sm:$0xf] }
  0x64   : > { %2374 = vrot.lane.b32.xlu1 %v2328_v39, %s3654_s20  ;;  %v1178_v39 = vrot.slane %v1176_v57, 1  ;;  %v1183_v57 = vshll.u32 %v4098_v4, 16  ;;  %v1190_v51 = vrot.slane %v1188_v22, 1  ;;  %v3198_v58 = vcombine.low %v3150_v32, %v4067_v27  ;;  %v3011_v22 = vld [vmem:[%s3700_s19 + $0xa8] sm:$0xe] }
  0x65   : > { %2248 = vrot.lane.b32.xlu0 %v2077_v40, %s3655_s21  ;;  %v2976_v40 = vld [vmem:[%s3700_s19 + $0xa8] sm:$0xf]  ;;  %v2101_v26 = vsel %vm417_vm1, %v2096_v55, %v2100_v50  ;;  %v2980_v32 = vld [vmem:[%s3700_s19 + $0xc0] sm:$0xf] }
  0x66   : > { %v1179_v53 = vsel %vm417_vm1, %v1174_v29, %v1178_v39  ;;  %v4136_v39 = vcombine.low %v3108_v25, %v4121_v2  ;;  %v1185_v28 = vrot.slane %v1183_v57, 1  ;;  %v3579_v27 = vld [vmem:[%s4881_s1 + $0x8] sm:$0x3f]  }
  0x67   : > { %3452 = vmatprep.subr.msk.bf16.mxu1 %vm1495_vm2, %v3579_v27 }
  0x68   : > { %2376 = vrot.lane.b32.xlu1 %v2331_v48, %s3654_s20  ;;  %v2332_v48 = vrot.slane %v3196_v19, 1  ;;  %v1342_v19 = vrot.slane %v4054_v37, 1  ;;  %4893 = vst [vmem:[#allocation3_spill] sm:$0xff] %v4136_v39  ;;  %v2108_v37 = vor.u32 %v2107_v54, %v2103_v23  ;;  %v1344_v54 = vrot.slane %v3058_v35, 1 }
  0x69   : > { %1374 = vrot.lane.b32.xlu0 %v1337_v0, %s3654_s20  ;;  %v4117_v0 = vcombine.low %v2976_v40, %v4104_v41  ;;  %v3151_v40 = vld [vmem:[%s3700_s19 + $0x54] sm:$0xe]  ;;  %v2115_v11 = vshrl.u32 %v4136_v39, 16  ;;  %v4189_v35 = vld [vmem:[%s3700_s19 + $0xbc] ss:$0 sps:$4 sm:$0x11]  }
  0x6a   : > { %v2334_v7 = vsel %vm690_vm0, %v2332_v48, %v2333_v56  ;;  %v1345_v48 = vrot.slane %v4112_v33, 1  ;;  %v4148_v56 = vld [vmem:[%s3700_s19 + $0x5c] ss:$0 sps:$4 sm:$0x11]   ;;  %v1343_v50 = vsel %vm690_vm0, %v1341_v14, %v1342_v19  ;;  %v2113_v23 = vsel %vm417_vm1, %v2108_v37, %v2112_v15 }
  0x6b   : > { %4892 = vst [vmem:[#allocation2_spill] sm:$0xff] %v4117_v0  ;;  %v1195_v29 = vshll.u32 %v4117_v0, 16  ;;  %v1193_v57 = vshrl.u32 %v4117_v0, 16  ;;  %v2122_v14 = vshll.u32 %v4148_v56, 16  ;;  %v3199_v19 = vcombine.low %v3151_v40, %v4121_v2  ;;  %v4195_v40 = vld [vmem:[%s3700_s19 + $0xc4] sm:$0xf] }
  0x6c   : > { %2250 = vrot.lane.b32.xlu1 %v2089_v9, %s3655_s21  ;;  %v2336_v9 = vrot.slane %v4072_v60, 1  ;;  %v1181_v60 = vshrl.u32 %v4098_v4, 16  ;;  %v4324_v0 = vld [vmem:[%s3700_s19 + $0x8c] ss:$0 sps:$4 sm:$0x11]  }
  0x6d   : > { %1248 = vrot.lane.b32.xlu0 %v1167_v38, %s3655_s21  ;;  %v4133_v38 = vld [vmem:[%s3700_s19 + $0xb0] ss:$0 sps:$4 sm:$0x11]   ;;  %v1197_v25 = vrot.slane %v1195_v29, 1 }
  0x6e   : > { %v1186_v55 = vor.u32 %v1185_v28, %v1181_v60  ;;  %v1200_v33 = vshll.u32 %v4133_v38, 16  ;;  %v4179_v60 = vld [vmem:[%s3700_s19 + $0x68] ss:$0 sps:$4 sm:$0x11]   ;;  %v3580_v28 = vld [vmem:[%s4881_s1] sm:$0x3f]  }
  0x6f   : > { %v1198_v29 = vor.u32 %v1197_v25, %v1193_v57  ;;  %3453 = vmatprep.subr.msk.bf16.mxu0 %vm1495_vm2, %v3580_v28  ;;  %v2124_v25 = vrot.slane %v2122_v14, 1  ;;  %v4221_v14 = vld [vmem:[%s3700_s19 + $0x70] sm:$0xf] }
  0x70   : > { %1376 = vrot.lane.b32.xlu1 %v1340_v42, %s3654_s20  ;;  %v2337_v42 = vsel %vm690_vm0, %v2335_v8, %v2336_v9  ;;  %v2978_v8 = vld [vmem:[%s3700_s19 + $0xb4] sm:$0xf]  ;;  %v4165_v9 = vld [vmem:[%s3700_s19 + $0xb8] sm:$0xf]  ;;  %v1191_v2 = vsel %vm417_vm1, %v1186_v55, %v1190_v51  ;;  %v1202_v37 = vrot.slane %v1200_v33, 1  ;;  %v2338_v51 = vrot.slane %v3198_v58, 1 }
  0x71   : > { %1250 = vrot.lane.b32.xlu0 %v1179_v53, %s3655_s21  ;;  %v2117_v53 = vshll.u32 %v4136_v39, 16  ;;  %v4186_v15 = vcombine.low %v2978_v8, %v4165_v9  ;;  %v2342_v33 = vrot.slane %v4148_v56, 1  ;;  %v3012_v8 = vld [vmem:[%s3700_s19 + $0xb4] sm:$0xe]  ;;  %v1212_v56 = vshll.u32 %v4189_v35, 16 }
  0x73   : > { %4895 = vst [vmem:[#allocation5_spill] sm:$0xff] %v4186_v15  ;;  %v1207_v58 = vshll.u32 %v4186_v15, 16 }
  0x74   : > { %2378 = vrot.lane.b32.xlu1 %v2334_v7, %s3654_s20  ;;  %v2339_v7 = vrot.slane %v4095_v16, 1  ;;  %v2119_v16 = vrot.slane %v2117_v53, 1  ;;  %v2341_v53 = vrot.slane %v3199_v19, 1  ;;  %v4214_v19 = vcombine.low %v2980_v32, %v4195_v40 }
  0x75   : > { %2252 = vrot.lane.b32.xlu0 %v2101_v26, %s3655_s21  ;;  %v4172_v26 = vcombine.low %v3110_v63, %v4155_v30  ;;  %v4200_v63 = vsel %vm1495_vm2, %v3580_v28, 0  ;;  %v1209_v32 = vrot.slane %v1207_v58, 1  ;;  %v3114_v58 = vld [vmem:[%s3700_s19 + $0x78] sm:$0xf] }
  0x76   : > { %3319 = vmatpush3.bf16.msra.mxu0 %v4200_v63  ;;  %v2120_v57 = vor.u32 %v2119_v16, %v2115_v11  ;;  %4896 = vst [vmem:[#allocation6_spill] sm:$0xff] %v4214_v19  ;;  %v4225_v16 = vld [vmem:[%s3700_s19 + $0xc8] ss:$0 sps:$4 sm:$0x11]  }
  0x77   : > { %4894 = vst [vmem:[#allocation4_spill] sm:$0xff] %v4172_v26  ;;  %v2129_v55 = vshll.u32 %v4172_v26, 16  ;;  %v2127_v11 = vshrl.u32 %v4172_v26, 16 }
  0x78   : > { %2380 = vrot.lane.b32.xlu1 %v2337_v42, %s3654_s20  ;;  %v1497_v42 = vsel %vm1495_vm2, %v3579_v27, 0 }
  0x79   : > { %1378 = vrot.lane.b32.xlu0 %v1343_v50, %s3654_s20  ;;  %v1346_v50 = vsel %vm690_vm0, %v1344_v54, %v1345_v48  ;;  %3285 = vmatpush3.bf16.msra.mxu1 %v1497_v42  ;;  %v1203_v48 = vsel %vm417_vm1, %v1198_v29, %v1202_v37  ;;  %v2134_v54 = vshll.u32 %v4179_v60, 16  ;;  %v2131_v27 = vrot.slane %v2129_v55, 1 }
  0x7a   : > { %3454 = vmatprep.subr.msk.bf16.mxu1 %vm1495_vm2, %v3580_v28  ;;  %v2125_v28 = vsel %vm417_vm1, %v2120_v57, %v2124_v25  ;;  %v1348_v29 = vrot.slane %v4133_v38, 1  ;;  %v1205_v37 = vshrl.u32 %v4186_v15, 16  ;;  %v1219_v42 = vshll.u32 %v4214_v19, 16 }
  0x7b   : > { %v1214_v55 = vrot.slane %v1212_v56, 1  ;;  %v3060_v57 = vcombine.low %v3012_v8, %v4165_v9  ;;  %v2343_v38 = vsel %vm690_vm0, %v2341_v53, %v2342_v33  ;;  %v2132_v25 = vor.u32 %v2131_v27, %v2127_v11  ;;  %v4252_v56 = vld [vmem:[%s3700_s19 + $0x64] sm:$0xf] }
  0x7c   : > { %2254 = vrot.lane.b32.xlu1 %v2113_v23, %s3655_s21  ;;  %v3059_v23 = vcombine.low %v3011_v22, %v4104_v41  ;;  %v3112_v41 = vld [vmem:[%s3700_s19 + $0x6c] sm:$0xf]  ;;  %v2340_v22 = vsel %vm690_vm0, %v2338_v51, %v2339_v7  ;;  %v3152_v7 = vld [vmem:[%s3700_s19 + $0x60] sm:$0xe]  ;;  %v2136_v51 = vrot.slane %v2134_v54, 1  ;;  %v1210_v9 = vor.u32 %v1209_v32, %v1205_v37 }
  0x7d   : > { %1252 = vrot.lane.b32.xlu0 %v1191_v2, %s3655_s21  ;;  %v3200_v26 = vcombine.low %v3152_v7, %v4155_v30  ;;  %v241_v54 = vld [vmem:[%s3700_s19 + $0x60] sm:$0xf]  ;;  %v1217_v53 = vshrl.u32 %v4214_v19, 16  ;;  %v1221_v33 = vrot.slane %v1219_v42, 1  ;;  %v1350_v11 = vrot.slane %v3060_v57, 1 }
  0x7e   : > { %v1347_v2 = vrot.slane %v3059_v23, 1  ;;  %v1224_v23 = vshll.u32 %v4225_v16, 16  ;;  %v2345_v27 = vrot.slane %v4179_v60, 1  ;;  %v1351_v30 = vrot.slane %v4189_v35, 1 }
  0x7f   : > { %v4265_v37 = vcombine.low %v241_v54, %v4252_v56  ;;  %v2344_v42 = vrot.slane %v3200_v26, 1  ;;  %v1215_v35 = vsel %vm417_vm1, %v1210_v9, %v1214_v55  ;;  %v4284_v19 = vld [vmem:[%s3700_s19 + $0x68] ss:$0 sps:$4 sm:$0x11]  }
  0x80   : > { %1380 = vrot.lane.b32.xlu1 %v1346_v50, %s3654_s20  ;;  %v4234_v50 = vcombine.low %v3112_v41, %v4221_v14  ;;  %v1349_v41 = vsel %vm690_vm0, %v1347_v2, %v1348_v29  ;;  %v3153_v2 = vld [vmem:[%s3700_s19 + $0x6c] sm:$0xe]  ;;  %v1226_v32 = vrot.slane %v1224_v23, 1  ;;  %v4279_v23 = vld [vmem:[%s3700_s19 + $0x70] sm:$0xf]  ;;  %v1352_v26 = vsel %vm690_vm0, %v1350_v11, %v1351_v30 }
  0x81   : > { %1254 = vrot.lane.b32.xlu0 %v1203_v48, %s3655_s21  ;;  %v4241_v48 = vld [vmem:[%s3700_s19 + $0x74] ss:$0 sps:$4 sm:$0x11]   ;;  %4899 = vst [vmem:[#allocation9_spill] sm:$0xff] %v4265_v37  ;;  %v517_v55 = vshll.u32 %v4265_v37, 16 }
  0x82   : > { %4897 = vst [vmem:[#allocation7_spill] sm:$0xff] %v4234_v50  ;;  %v2141_v8 = vshll.u32 %v4234_v50, 16  ;;  %v2139_v60 = vshrl.u32 %v4234_v50, 16  ;;  %v2146_v7 = vshll.u32 %v4241_v48, 16  ;;  %v4298_v50 = vld [vmem:[%s3700_s19 + $0x88] sm:$0xf] }
  0x83   : > { %v2348_v15 = vrot.slane %v4241_v48, 1 }
  0x84   : > { %2382 = vrot.lane.b32.xlu1 %v2340_v22, %s3654_s20  ;;  %v4248_v22 = vld [vmem:[%s3700_s19 + $0x7c] sm:$0xf]  ;;  %v2143_v57 = vrot.slane %v2141_v8, 1 }
  0x85   : > { %2256 = vrot.lane.b32.xlu0 %v2125_v28, %s3655_s21  ;;  %v2137_v28 = vsel %vm417_vm1, %v2132_v25, %v2136_v51  ;;  %v4262_v29 = vcombine.low %v3114_v58, %v4248_v22  ;;  %v1222_v51 = vor.u32 %v1221_v33, %v1217_v53  ;;  %v3201_v25 = vcombine.low %v3153_v2, %v4221_v14  ;;  %v3013_v58 = vld [vmem:[%s3700_s19 + $0xc0] sm:$0xe]  ;;  %v3116_v2 = vld [vmem:[%s3700_s19 + $0x84] sm:$0xf] }
  0x86   : > { %v2346_v53 = vsel %vm690_vm0, %v2344_v42, %v2345_v27  ;;  %v2148_v33 = vrot.slane %v2146_v7, 1  ;;  %v3061_v11 = vcombine.low %v3013_v58, %v4195_v40  ;;  %v515_v40 = vshrl.u32 %v4265_v37, 16  ;;  %v3154_v37 = vld [vmem:[%s3700_s19 + $0x78] sm:$0xe] }
  0x87   : > { %4898 = vst [vmem:[#allocation8_spill] sm:$0xff] %v4262_v29  ;;  %v2153_v54 = vshll.u32 %v4262_v29, 16  ;;  %v1227_v8 = vsel %vm417_vm1, %v1222_v51, %v1226_v32  ;;  %v2151_v27 = vshrl.u32 %v4262_v29, 16  ;;  %v281_v32 = vld [vmem:[%s3700_s19 + $0x60] sm:$0xe]  ;;  %v519_v7 = vrot.slane %v517_v55, 1 }
  0x88   : > { %2384 = vrot.lane.b32.xlu1 %v2343_v38, %s3654_s20  ;;  %v4272_v38 = vld [vmem:[%s3700_s19 + $0x80] ss:$0 sps:$4 sm:$0x11]   ;;  %v522_v51 = vshll.u32 %v4284_v19, 16  ;;  %v1353_v58 = vrot.slane %v3061_v11, 1  ;;  %v2942_v29 = vcombine.low %v281_v32, %v4252_v56 }
  0x89   : > { %1382 = vrot.lane.b32.xlu0 %v1349_v41, %s3654_s20  ;;  %v243_v41 = vld [vmem:[%s3700_s19 + $0x6c] sm:$0xf]  ;;  %v2158_v42 = vshll.u32 %v4272_v38, 16  ;;  %v4331_v56 = vld [vmem:[%s3700_s19 + $0x94] sm:$0xf] }
  0x8a   : > { %v4294_v30 = vcombine.low %v243_v41, %v4279_v23  ;;  %v1354_v41 = vrot.slane %v4225_v16, 1  ;;  %v520_v16 = vor.u32 %v519_v7, %v515_v40  ;;  %v524_v11 = vrot.slane %v522_v51, 1  ;;  %v245_v51 = vld [vmem:[%s3700_s19 + $0x78] sm:$0xf] }
  0x8b   : > { %v716_v40 = vrot.slane %v4284_v19, 1  ;;  %v3202_v7 = vcombine.low %v3154_v37, %v4248_v22 }
  0x8c   : > { %2258 = vrot.lane.b32.xlu1 %v2137_v28, %s3655_s21  ;;  %v4288_v9 = vpop.permute.xlu0 %741  ;;  %v2144_v28 = vor.u32 %v2143_v57, %v2139_v60  ;;  %v2155_v60 = vrot.slane %v2153_v54, 1  ;;  %v529_v54 = vshll.u32 %v4294_v30, 16 }
  0x8d   : > { %1256 = vrot.lane.b32.xlu0 %v1215_v35, %s3655_s21  ;;  %v2347_v35 = vrot.slane %v3201_v25, 1  ;;  %v4309_v25 = vcombine.low %v3116_v2, %v4298_v50  ;;  %v2160_v2 = vrot.slane %v2158_v42, 1 }
  0x8e   : > { %v740_v14 = vpop.permute.xlu1 %739  ;;  %v2149_v48 = vsel %vm417_vm1, %v2144_v28, %v2148_v33  ;;  %v2156_v28 = vor.u32 %v2155_v60, %v2151_v27  ;;  %v527_v27 = vshrl.u32 %v4294_v30, 16  ;;  %v531_v42 = vrot.slane %v529_v54, 1 }
  0x8f   : > { %v525_v54 = vsel %vm417_vm1, %v520_v16, %v524_v11  ;;  %v282_v16 = vld [vmem:[%s3700_s19 + $0x6c] sm:$0xe]  ;;  %v4361_v11 = vld [vmem:[%s3700_s19 + $0x98] ss:$0 sps:$4 sm:$0x11]  }
  0x90   : > { %1384 = vrot.lane.b32.xlu1 %v1352_v26, %s3654_s20  ;;  %v4314_v26 = vld [vmem:[%s3700_s19 + $0x74] ss:$0 sps:$4 sm:$0x11]  }
  0x91   : > { %1258 = vrot.lane.b32.xlu0 %v1227_v8, %s3655_s21  ;;  %v2349_v8 = vsel %vm690_vm0, %v2347_v35, %v2348_v15  ;;  %v2165_v15 = vshll.u32 %v4309_v25, 16  ;;  %v3118_v35 = vld [vmem:[%s3700_s19 + $0x90] sm:$0xf]  ;;  %v534_v32 = vshll.u32 %v4314_v26, 16 }
  0x92   : > { %v1357_v57 = vpop.permute.xlu1 %1356 }
  0x93   : > { %v611_v55 = vpop.permute.xlu0 %610  ;;  %v2167_v37 = vrot.slane %v2165_v15, 1 }
  0x94   : > { %2386 = vrot.lane.b32.xlu1 %v2346_v53, %s3654_s20  ;;  %v773_v33 = vsel %vm771_vm3, %v3713_v18, %v611_v55  ;;  %v1355_v18 = vsel %vm690_vm0, %v1353_v58, %v1354_v41  ;;  %v2161_v41 = vsel %vm417_vm1, %v2156_v28, %v2160_v2  ;;  %v3155_v55 = vld [vmem:[%s3700_s19 + $0x84] sm:$0xe]  ;;  %v536_v28 = vrot.slane %v534_v32, 1 }
  0x95   : > { %2260 = vrot.lane.b32.xlu0 %v2149_v48, %s3655_s21  ;;  %v806_v53 = vsel %vm804_vm4, %v773_v33, %v740_v14  ;;  %v715_v14 = vrot.slane %v2942_v29, 1  ;;  %v4342_v48 = vld [vmem:[%s3700_s19 + $0x7c] sm:$0xf]  ;;  %v2163_v29 = vshrl.u32 %v4309_v25, 16  ;;  %v532_v33 = vor.u32 %v531_v42, %v527_v27  ;;  %v247_v27 = vld [vmem:[%s3700_s19 + $0x84] sm:$0xf] }
  0x96   : > { %v1359_v39 = vpop.permute.xlu1 %1358  ;;  %3320 = vmatprep.mubr.msk.bf16.mxu0 %vm1462_vm5, %v806_v53  ;;  %v4373_v42 = vld [vmem:[%s3700_s19 + $0x88] sm:$0xf] }
  0x97   : > { %v1229_v60 = vpop.permute.xlu0 %1228 }
  0x98   : > { %2388 = vrot.lane.b32.xlu1 %v2349_v8, %s3654_s20  ;;  %v1389_v58 = vsel %vm771_vm3, %v3719_v21, %v1229_v60  ;;  %v4350_v8 = vcombine.low %v3118_v35, %v4331_v56  ;;  %v2170_v21 = vshll.u32 %v4324_v0, 16  ;;  %v2350_v35 = vrot.slane %v3202_v7, 1 }
  0x99   : > { %1386 = vrot.lane.b32.xlu0 %v1355_v18, %s3654_s20  ;;  %v1421_v19 = vsel %vm804_vm4, %v1389_v58, %v1357_v57  ;;  %v4364_v57 = vcombine.low %v245_v51, %v4342_v48  ;;  %v2351_v18 = vrot.slane %v4272_v38, 1  ;;  %v717_v60 = vsel %vm690_vm0, %v715_v14, %v716_v40 }
  0x9a   : > { %v613_v22 = vpop.permute.xlu1 %612  ;;  %3286 = vmatprep.mubr.msk.bf16.mxu1 %vm1462_vm5, %v1421_v19  ;;  %v2177_v51 = vshll.u32 %v4350_v8, 16  ;;  %v2168_v7 = vor.u32 %v2167_v37, %v2163_v29  ;;  %v2172_v58 = vrot.slane %v2170_v21, 1  ;;  %v4390_v40 = vcombine.low %v247_v27, %v4373_v42  ;;  %v4394_v19 = vld [vmem:[%s3700_s19 + $0xa0] sm:$0xf] }
  0x9b   : > { %v775_v2 = vsel %vm771_vm3, %v3717_v20, %v613_v22  ;;  %v1231_v53 = vpop.permute.xlu0 %1230  ;;  %v3203_v20 = vcombine.low %v3155_v55, %v4298_v50  ;;  %v541_v14 = vshll.u32 %v4364_v57, 16  ;;  %v3120_v55 = vld [vmem:[%s3700_s19 + $0x9c] sm:$0xf]  ;;  %v2354_v22 = vrot.slane %v4324_v0, 1 }
  0x9c   : > { %2262 = vrot.lane.b32.xlu1 %v2161_v41, %s3655_s21  ;;  %v808_v15 = vsel %vm804_vm4, %v775_v2, %v4288_v9  ;;  %v1391_v32 = vsel %vm771_vm3, %v3729_v34, %v1231_v53  ;;  %v4381_v9 = vld [vmem:[%s3700_s19 + $0x80] ss:$0 sps:$4 sm:$0x11]   ;;  %v2943_v41 = vcombine.low %v282_v16, %v4279_v23  ;;  %v537_v34 = vsel %vm417_vm1, %v532_v33, %v536_v28  ;;  %v283_v28 = vld [vmem:[%s3700_s19 + $0x78] sm:$0xe] }
  0x9d   : > { %3321 = vmatmul.mubr.msk.bf16.vlgmr.msra.gmra.mrb[0].mxu0 %vm1462_vm5, %v808_v15  ;;  %626 = vrot.lane.b32.xlu0 %v525_v54, %s3655_s21  ;;  %v1423_v50 = vsel %vm804_vm4, %v1391_v32, %v1359_v39  ;;  %v2352_v39 = vsel %vm690_vm0, %v2350_v35, %v2351_v18  ;;  %v2353_v23 = vrot.slane %v3203_v20, 1  ;;  %v2182_v29 = vshll.u32 %v4361_v11, 16 }
  0x9e   : > { %v1233_v38 = vpop.permute.xlu1 %1232  ;;  %3287 = vmatmul.mubr.msk.bf16.vlgmr.msra.gmra.mrb[0].mxu1 %vm1462_vm5, %v1423_v50  ;;  %v719_v37 = vrot.slane %v4314_v26, 1  ;;  %v2175_v21 = vshrl.u32 %v4350_v8, 16  ;;  %v2179_v2 = vrot.slane %v2177_v51, 1  ;;  %v546_v33 = vshll.u32 %v4381_v9, 16  ;;  %v3156_v51 = vld [vmem:[%s3700_s19 + $0x90] sm:$0xe] }
  0x9f   : > { %v615_v54 = vpop.permute.xlu0 %614  ;;  %3387 = vmatpush3.bf16.msra.mxu1 %v4200_v63  ;;  %v2173_v53 = vsel %vm417_vm1, %v2168_v7, %v2172_v58  ;;  %v718_v15 = vrot.slane %v2943_v41, 1  ;;  %v4410_v63 = vld [vmem:[%s3700_s19 + $0x8c] ss:$0 sps:$4 sm:$0x11]   ;;  %v4413_v26 = vcombine.low %v3120_v55, %v4394_v19  ;;  %v539_v18 = vshrl.u32 %v4364_v57, 16 }
  0xa0   : > { %755 = vrot.lane.b32.xlu1 %v717_v60, %s3654_s20  ;;  %v777_v16 = vsel %vm771_vm3, %v3757_v3, %v615_v54  ;;  %v543_v3 = vrot.slane %v541_v14, 1  ;;  %v553_v20 = vshll.u32 %v4390_v40, 16  ;;  %v2184_v32 = vrot.slane %v2182_v29, 1  ;;  %v4423_v50 = vld [vmem:[%s3700_s19 + $0x9c] sm:$0xe] }
  0xa1   : > { %628 = vrot.lane.b32.xlu0 %v537_v34, %s3655_s21  ;;  %v2944_v60 = vcombine.low %v283_v28, %v4342_v48  ;;  %v2355_v7 = vsel %vm690_vm0, %v2353_v23, %v2354_v22  ;;  %v2180_v58 = vor.u32 %v2179_v2, %v2175_v21  ;;  %v548_v41 = vrot.slane %v546_v33, 1  ;;  %v4427_v34 = vld [vmem:[%s3700_s19 + $0xa4] ss:$0 sps:$4 sm:$0x11]   ;;  %v3122_v14 = vld [vmem:[%s3700_s19 + $0xa8] sm:$0xf] }
  0xa2   : > { %v744_v0 = vpop.permute.xlu1 %743  ;;  %v1393_v55 = vsel %vm771_vm3, %v3752_v62, %v1233_v38  ;;  %v720_v48 = vsel %vm690_vm0, %v718_v15, %v719_v37  ;;  %v2189_v29 = vshll.u32 %v4413_v26, 16  ;;  %v4437_v23 = vld [vmem:[%s3700_s19 + $0xac] sm:$0xf]  ;;  %v544_v21 = vor.u32 %v543_v3, %v539_v18  ;;  %v249_v28 = vld [vmem:[%s3700_s19 + $0x90] sm:$0xf] }
  0xa3   : > { %v810_v35 = vsel %vm804_vm4, %v777_v16, %v744_v0  ;;  %v617_v27 = vpop.permute.xlu0 %616  ;;  %v555_v2 = vrot.slane %v553_v20, 1  ;;  %v558_v33 = vshll.u32 %v4410_v63, 16  ;;  %v4443_v62 = vld [vmem:[%s3700_s19 + $0x94] sm:$0xf]  ;;  %v721_v37 = vrot.slane %v2944_v60, 1 }
  0xa4   : > { %2390 = vrot.lane.b32.xlu1 %v2352_v39, %s3654_s20  ;;  %3324 = vmatprep.mubr.msk.bf16.mxu0 %vm1462_vm5, %v810_v35  ;;  %v551_v39 = vshrl.u32 %v4390_v40, 16  ;;  %v722_v16 = vrot.slane %v4381_v9, 1  ;;  %v3204_v0 = vcombine.low %v3156_v51, %v4331_v56  ;;  %v2187_v15 = vshrl.u32 %v4413_v26, 16  ;;  %v284_v18 = vld [vmem:[%s3700_s19 + $0x84] sm:$0xe] }
  0xa5   : > { %2264 = vrot.lane.b32.xlu0 %v2173_v53, %s3655_s21  ;;  %v2185_v53 = vsel %vm417_vm1, %v2180_v58, %v2184_v32  ;;  %v3205_v35 = vcombine.low %v4423_v50, %v4394_v19  ;;  %v4455_v3 = vcombine.low %v3122_v14, %v4437_v23  ;;  %v2191_v56 = vrot.slane %v2189_v29, 1  ;;  %v4467_v58 = vld [vmem:[%s3700_s19 + $0xb0] ss:$0 sps:$4 sm:$0x11]  }
  0xa6   : > { %v1361_v54 = vpop.permute.xlu1 %1360  ;;  %v2194_v32 = vshll.u32 %v4427_v34, 16  ;;  %v4462_v60 = vcombine.low %v249_v28, %v4443_v62  ;;  %v549_v51 = vsel %vm417_vm1, %v544_v21, %v548_v41  ;;  %v556_v50 = vor.u32 %v555_v2, %v551_v39  ;;  %v4480_v39 = vld [vmem:[%s3700_s19 + $0xa0] sm:$0xf] }
  0xa7   : > { %v1425_v22 = vsel %vm804_vm4, %v1393_v55, %v1361_v54  ;;  %v1235_v38 = vpop.permute.xlu0 %1234  ;;  %v779_v14 = vsel %vm771_vm3, %v3771_v24, %v617_v27  ;;  %v2357_v54 = vrot.slane %v4361_v11, 1  ;;  %v2945_v41 = vcombine.low %v284_v18, %v4373_v42  ;;  %v3124_v18 = vld [vmem:[%s3700_s19 + $0xb4] sm:$0xf] }
  0xa8   : > { %2392 = vrot.lane.b32.xlu1 %v2355_v7, %s3654_s20  ;;  %3290 = vmatprep.mubr.msk.bf16.mxu1 %vm1462_vm5, %v1425_v22  ;;  %v1395_v20 = vsel %vm771_vm3, %v3788_v44, %v1235_v38  ;;  %v560_v7 = vrot.slane %v558_v33, 1  ;;  %v3627_v44 = vld [vmem:[%s4881_s1 + $0x10] sm:$0x3f]   ;;  %v723_v22 = vsel %vm690_vm0, %v721_v37, %v722_v16  ;;  %v2356_v21 = vrot.slane %v3204_v0, 1 }
  0xa9   : > { %757 = vrot.lane.b32.xlu0 %v720_v48, %s3654_s20  ;;  %v251_v48 = vld [vmem:[%s3700_s19 + $0x9c] sm:$0xf]  ;;  %v2201_v24 = vshll.u32 %v4455_v3, 16  ;;  %3455 = vmatprep.subr.msk.bf16.mxu0 %vm1495_vm2, %v3627_v44  ;;  %v2192_v42 = vor.u32 %v2191_v56, %v2187_v15  ;;  %v2196_v27 = vrot.slane %v2194_v32, 1  ;;  %v725_v2 = vrot.slane %v4410_v63, 1 }
  0xaa   : > { %v1363_v9 = vpop.permute.xlu1 %1362  ;;  %v4490_v33 = vld [vmem:[%s3700_s19 + $0x98] ss:$0 sps:$4 sm:$0x11]   ;;  %v565_v28 = vshll.u32 %v4462_v60, 16  ;;  %v561_v38 = vsel %vm417_vm1, %v556_v50, %v560_v7  ;;  %v2359_v37 = vrot.slane %v3205_v35, 1  ;;  %v2360_v16 = vrot.slane %v4427_v34, 1 }
  0xab   : > { %v1427_v19 = vsel %vm804_vm4, %v1395_v20, %v1363_v9  ;;  %v746_v55 = vpop.permute.xlu0 %745  ;;  %v4496_v0 = vcombine.low %v251_v48, %v4480_v39  ;;  %v724_v15 = vrot.slane %v2945_v41, 1  ;;  %v2206_v63 = vshll.u32 %v4467_v58, 16  ;;  %v4502_v20 = vld [vmem:[%s3700_s19 + $0xb8] sm:$0xf] }
  0xac   : > { %2266 = vrot.lane.b32.xlu1 %v2185_v53, %s3655_s21  ;;  %3291 = vmatmul.mubr.msk.bf16.gmra.mrb[4].mxu1 %vm1462_vm5, %v1427_v19  ;;  %v812_v29 = vsel %vm804_vm4, %v779_v14, %v746_v55  ;;  %v2358_v9 = vsel %vm690_vm0, %v2356_v21, %v2357_v54  ;;  %v2199_v56 = vshrl.u32 %v4455_v3, 16  ;;  %v2203_v35 = vrot.slane %v2201_v24, 1  ;;  %v4508_v32 = vld [vmem:[%s3700_s19 + $0xa4] ss:$0 sps:$4 sm:$0x11]  }
  0xad   : > { %630 = vrot.lane.b32.xlu0 %v549_v51, %s3655_s21  ;;  %3325 = vmatmul.mubr.msk.bf16.gmra.mrb[4].mxu0 %vm1462_vm5, %v812_v29  ;;  %v563_v34 = vshrl.u32 %v4462_v60, 16  ;;  %v2197_v50 = vsel %vm417_vm1, %v2192_v42, %v2196_v27  ;;  %v567_v7 = vrot.slane %v565_v28, 1  ;;  %v570_v14 = vshll.u32 %v4490_v33, 16  ;;  %v285_v55 = vld [vmem:[%s3700_s19 + $0x90] sm:$0xe] }
  0xae   : > { %v1237_v11 = vpop.permute.xlu1 %1236  ;;  %v577_v41 = vshll.u32 %v4496_v0, 16  ;;  %v4519_v48 = vcombine.low %v3124_v18, %v4502_v20  ;;  %v2361_v21 = vsel %vm690_vm0, %v2359_v37, %v2360_v16  ;;  %v2204_v24 = vor.u32 %v2203_v35, %v2199_v56  ;;  %v3158_v28 = vld [vmem:[%s3700_s19 + $0xa8] sm:$0xe]  ;;  %v3126_v16 = vld [vmem:[%s3700_s19 + $0xc0] sm:$0xf] }
  0xaf   : > { %v619_v53 = vpop.permute.xlu0 %618  ;;  %v2946_v42 = vcombine.low %v285_v55, %v4443_v62  ;;  %v582_v27 = vshll.u32 %v4508_v32, 16  ;;  %v572_v18 = vrot.slane %v570_v14, 1  ;;  %v575_v37 = vshrl.u32 %v4496_v0, 16  ;;  %v4537_v62 = vld [vmem:[%s3700_s19 + $0xc4] sm:$0xf] }
  0xb0   : > { %759 = vrot.lane.b32.xlu1 %v723_v22, %s3654_s20  ;;  %v781_v19 = vsel %vm771_vm3, %v3816_v13, %v619_v53  ;;  %v2513_v13 = vsel %vm1495_vm2, %v3627_v44, 0  ;;  %v2208_v22 = vrot.slane %v2206_v63, 1  ;;  %v1397_v44 = vsel %vm771_vm3, %v3803_v1, %v1237_v11  ;;  %v4544_v1 = vld [vmem:[%s3700_s19 + $0xac] sm:$0xf] }
  0xb1   : > { %632 = vrot.lane.b32.xlu0 %v561_v38, %s3655_s21  ;;  %v4529_v38 = vld [vmem:[%s3700_s19 + $0xbc] ss:$0 sps:$4 sm:$0x11]   ;;  %3353 = vmatpush3.bf16.msra.mxu0 %v2513_v13  ;;  %v568_v63 = vor.u32 %v567_v7, %v563_v34  ;;  %v726_v56 = vsel %vm690_vm0, %v724_v15, %v725_v2  ;;  %v579_v35 = vrot.slane %v577_v41, 1  ;;  %v728_v34 = vrot.slane %v4490_v33, 1 }
  0xb2   : > { %v748_v51 = vpop.permute.xlu1 %747  ;;  %v2209_v7 = vsel %vm417_vm1, %v2204_v24, %v2208_v22  ;;  %v727_v14 = vrot.slane %v2946_v42, 1  ;;  %v584_v2 = vrot.slane %v582_v27, 1  ;;  %v3159_v15 = vld [vmem:[%s3700_s19 + $0xb4] sm:$0xe]  ;;  %v4553_v55 = vcombine.low %v3126_v16, %v4537_v62  ;;  %v286_v33 = vld [vmem:[%s3700_s19 + $0x9c] sm:$0xe] }
  0xb3   : > { %v814_v54 = vsel %vm804_vm4, %v781_v19, %v748_v51  ;;  %v621_v29 = vpop.permute.xlu0 %620  ;;  %v2213_v19 = vshll.u32 %v4519_v48, 16  ;;  %v253_v51 = vld [vmem:[%s3700_s19 + $0xa8] sm:$0xf]  ;;  %v573_v13 = vsel %vm417_vm1, %v568_v63, %v572_v18  ;;  %v580_v24 = vor.u32 %v579_v35, %v575_v37  ;;  %v255_v18 = vld [vmem:[%s3700_s19 + $0xb4] sm:$0xf] }
  0xb4   : > { %2394 = vrot.lane.b32.xlu1 %v2358_v9, %s3654_s20  ;;  %3328 = vmatprep.mubr.msk.bf16.mxu0 %vm1462_vm5, %v814_v54  ;;  %v4562_v22 = vcombine.low %v253_v51, %v4544_v1  ;;  %v2211_v42 = vshrl.u32 %v4519_v48, 16  ;;  %v783_v27 = vsel %vm771_vm3, %v3832_v31, %v621_v29  ;;  %v3207_v63 = vcombine.low %v3159_v15, %v4502_v20  ;;  %v4574_v16 = vld [vmem:[%s3700_s19 + $0xb8] sm:$0xf]  ;;  %v4580_v29 = vld [vmem:[%s3700_s19 + $0xc8] ss:$0 sps:$4 sm:$0x11]  }
  0xb5   : > { %2268 = vrot.lane.b32.xlu0 %v2197_v50, %s3655_s21  ;;  %v3206_v50 = vcombine.low %v3158_v28, %v4437_v23  ;;  %v2218_v23 = vshll.u32 %v4529_v38, 16  ;;  %v2947_v31 = vcombine.low %v286_v33, %v4480_v39  ;;  %v2366_v20 = vrot.slane %v4529_v38, 1  ;;  %v4587_v35 = vld [vmem:[%s3700_s19 + $0xb0] ss:$0 sps:$4 sm:$0x11]  }
  0xb6   : > { %v1365_v53 = vpop.permute.xlu1 %1364  ;;  %v585_v39 = vsel %vm417_vm1, %v580_v24, %v584_v2  ;;  %v731_v38 = vrot.slane %v4508_v32, 1  ;;  %v3128_v15 = vld [vmem:[%s3700_s19 + $0xcc] sm:$0xf]  ;;  %v2223_v2 = vshrl.u32 %v4553_v55, 16  ;;  %v287_v33 = vld [vmem:[%s3700_s19 + $0xa8] sm:$0xe] }
  0xb7   : > { %v1429_v9 = vsel %vm804_vm4, %v1397_v44, %v1365_v53  ;;  %v1239_v11 = vpop.permute.xlu0 %1238  ;;  %v2362_v44 = vrot.slane %v3206_v50, 1  ;;  %v2363_v53 = vrot.slane %v4467_v58, 1 }
  0xb8   : > { %2396 = vrot.lane.b32.xlu1 %v2361_v21, %s3654_s20  ;;  %3294 = vmatprep.mubr.msk.bf16.mxu1 %vm1462_vm5, %v1429_v9  ;;  %v1399_v54 = vsel %vm771_vm3, %v3842_v43, %v1239_v11  ;;  %v2215_v43 = vrot.slane %v2213_v19, 1  ;;  %v729_v9 = vsel %vm690_vm0, %v727_v14, %v728_v34  ;;  %v589_v19 = vshll.u32 %v4562_v22, 16 }
  0xb9   : > { %761 = vrot.lane.b32.xlu0 %v726_v56, %s3654_s20  ;;  %v2225_v56 = vshll.u32 %v4553_v55, 16  ;;  %v2220_v11 = vrot.slane %v2218_v23, 1  ;;  %v4592_v34 = vcombine.low %v255_v18, %v4574_v16  ;;  %v2365_v14 = vrot.slane %v3207_v63, 1 }
  0xba   : > { %v1367_v41 = vpop.permute.xlu1 %1366  ;;  %v2216_v51 = vor.u32 %v2215_v43, %v2211_v42  ;;  %v2230_v23 = vshll.u32 %v4580_v29, 16  ;;  %v587_v42 = vshrl.u32 %v4562_v22, 16  ;;  %v591_v32 = vrot.slane %v589_v19, 1  ;;  %v3160_v19 = vld [vmem:[%s3700_s19 + $0xc0] sm:$0xe] }
  0xbb   : > { %v1431_v21 = vsel %vm804_vm4, %v1399_v54, %v1367_v41  ;;  %v750_v28 = vpop.permute.xlu0 %749  ;;  %v4599_v54 = vld [vmem:[%s3700_s19 + $0xd0] sm:$0xf]  ;;  %v730_v41 = vrot.slane %v2947_v31, 1  ;;  %v594_v43 = vshll.u32 %v4587_v35, 16  ;;  %v2948_v18 = vcombine.low %v287_v33, %v4544_v1 }
  0xbc   : > { %2270 = vrot.lane.b32.xlu1 %v2209_v7, %s3655_s21  ;;  %3295 = vmatmul.mubr.msk.bf16.gmra.mrb[8].mxu1 %vm1462_vm5, %v1431_v21  ;;  %v816_v37 = vsel %vm804_vm4, %v783_v27, %v750_v28  ;;  %v2364_v7 = vsel %vm690_vm0, %v2362_v44, %v2363_v53  ;;  %v4610_v27 = vld [vmem:[%s3700_s19 + $0xbc] ss:$0 sps:$4 sm:$0x11]   ;;  %v2221_v44 = vsel %vm417_vm1, %v2216_v51, %v2220_v11  ;;  %v601_v53 = vshll.u32 %v4592_v34, 16 }
  0xbd   : > { %634 = vrot.lane.b32.xlu0 %v573_v13, %s3655_s21  ;;  %3329 = vmatmul.mubr.msk.bf16.gmra.mrb[8].mxu0 %vm1462_vm5, %v816_v37  ;;  %v2227_v13 = vrot.slane %v2225_v56, 1  ;;  %v4616_v63 = vcombine.low %v3128_v15, %v4599_v54  ;;  %v2367_v37 = vsel %vm690_vm0, %v2365_v14, %v2366_v20  ;;  %v2232_v56 = vrot.slane %v2230_v23, 1  ;;  %v3626_v15 = vld [vmem:[%s3700_s19 + $0xd4] ss:$0 sps:$4 sm:$0x11]  }
  0xbe   : > { %v1241_v58 = vpop.permute.xlu1 %1240  ;;  %v592_v11 = vor.u32 %v591_v32, %v587_v42  ;;  %v599_v20 = vshrl.u32 %v4592_v34, 16  ;;  %v603_v14 = vrot.slane %v601_v53, 1  ;;  %v2242_v42 = vshll.u32 %v3626_v15, 16  ;;  %v3161_v32 = vld [vmem:[%s3700_s19 + $0xcc] sm:$0xe] }
  0xbf   : > { %v623_v50 = vpop.permute.xlu0 %622  ;;  %v2228_v31 = vor.u32 %v2227_v13, %v2223_v2  ;;  %v3208_v13 = vcombine.low %v3160_v19, %v4537_v62 }
  0xc0   : > { %763 = vrot.lane.b32.xlu1 %v729_v9, %s3654_s20  ;;  %v785_v21 = vsel %vm771_vm3, %v3871_v12, %v623_v50  ;;  %v732_v9 = vsel %vm690_vm0, %v730_v41, %v731_v38  ;;  %v596_v50 = vrot.slane %v594_v43, 1  ;;  %v2237_v38 = vshll.u32 %v4616_v63, 16 }
  0xc1   : > { %636 = vrot.lane.b32.xlu0 %v585_v39, %s3655_s21  ;;  %v1401_v39 = vsel %vm771_vm3, %v3861_v5, %v1241_v58  ;;  %v733_v5 = vrot.slane %v2948_v18, 1  ;;  %v734_v58 = vrot.slane %v4587_v35, 1  ;;  %v2233_v2 = vsel %vm417_vm1, %v2228_v31, %v2232_v56  ;;  %v288_v18 = vld [vmem:[%s3700_s19 + $0xb4] sm:$0xe] }
  0xc2   : > { %v752_v24 = vpop.permute.xlu1 %751  ;;  %v2235_v35 = vshrl.u32 %v4616_v63, 16  ;;  %v2369_v31 = vrot.slane %v4580_v29, 1  ;;  %v3209_v56 = vcombine.low %v3161_v32, %v4599_v54  ;;  %v2372_v29 = vrot.slane %v3626_v15, 1 }
  0xc3   : > { %v818_v28 = vsel %vm804_vm4, %v785_v21, %v752_v24  ;;  %v625_v12 = vpop.permute.xlu0 %624  ;;  %v597_v21 = vsel %vm417_vm1, %v592_v11, %v596_v50 }
  0xc4   : > { %2398 = vrot.lane.b32.xlu1 %v2364_v7, %s3654_s20  ;;  %3332 = vmatprep.mubr.msk.bf16.mxu0 %vm1462_vm5, %v818_v28  ;;  %v606_v7 = vshll.u32 %v4610_v27, 16  ;;  %v604_v28 = vor.u32 %v603_v14, %v599_v20  ;;  %v787_v62 = vsel %vm771_vm3, %v3890_v36, %v625_v12 }
  0xc5   : > { %2272 = vrot.lane.b32.xlu0 %v2221_v44, %s3655_s21  ;;  %v2239_v44 = vrot.slane %v2237_v38, 1 }
  0xc6   : > { %v1369_v51 = vpop.permute.xlu1 %1368  ;;  %v608_v24 = vrot.slane %v606_v7, 1  ;;  %v2371_v7 = vrot.slane %v3209_v56, 1 }
  0xc7   : > { %v1433_v1 = vsel %vm804_vm4, %v1401_v39, %v1369_v51  ;;  %v1243_v41 = vpop.permute.xlu0 %1242  ;;  %v2240_v19 = vor.u32 %v2239_v44, %v2235_v35  ;;  %v2244_v39 = vrot.slane %v2242_v42, 1  ;;  %v2949_v51 = vcombine.low %v288_v18, %v4574_v16 }
  0xc8   : > { %2400 = vrot.lane.b32.xlu1 %v2367_v37, %s3654_s20  ;;  %3298 = vmatprep.mubr.msk.bf16.mxu1 %vm1462_vm5, %v1433_v1  ;;  %v1403_v23 = vsel %vm771_vm3, %v3904_v52, %v1243_v41  ;;  %v735_v52 = vsel %vm690_vm0, %v733_v5, %v734_v58  ;;  %v609_v12 = vsel %vm417_vm1, %v604_v28, %v608_v24  ;;  %v737_v16 = vrot.slane %v4610_v27, 1 }
  0xc9   : > { %765 = vrot.lane.b32.xlu0 %v732_v9, %s3654_s20  ;;  %v2368_v9 = vrot.slane %v3208_v13, 1  ;;  %v2245_v14 = vsel %vm417_vm1, %v2240_v19, %v2244_v39  ;;  %v736_v38 = vrot.slane %v2949_v51, 1  ;;  %v2373_v15 = vsel %vm690_vm0, %v2371_v7, %v2372_v29 }
  0xca   : > { %v1371_v33 = vpop.permute.xlu1 %1370 }
  0xcb   : > { %v1435_v43 = vsel %vm804_vm4, %v1403_v23, %v1371_v33  ;;  %v754_v53 = vpop.permute.xlu0 %753  ;;  %v2370_v50 = vsel %vm690_vm0, %v2368_v9, %v2369_v31 }
  0xcc   : > { %2274 = vrot.lane.b32.xlu1 %v2233_v2, %s3655_s21  ;;  %3299 = vmatmul.mubr.msk.bf16.gmra.mrb[12].mxu1 %vm1462_vm5, %v1435_v43  ;;  %v820_v37 = vsel %vm804_vm4, %v787_v62, %v754_v53  ;;  %v738_v2 = vsel %vm690_vm0, %v736_v38, %v737_v16  ;;  %v4902_v16 = vld [vmem:[#allocation5_spill] sm:$0xff] }
  0xcd   : > { %638 = vrot.lane.b32.xlu0 %v597_v21, %s3655_s21  ;;  %3333 = vmatmul.mubr.msk.bf16.gmra.mrb[12].mxu0 %vm1462_vm5, %v820_v37 }
  0xce   : > { %v2247_v36 = vpop.permute.xlu1 %2246 }
  0xcf   : > { %v1245_v11 = vpop.permute.xlu0 %1244 }
  0xd0   : > { %767 = vrot.lane.b32.xlu1 %v735_v52, %s3654_s20  ;;  %v1405_v54 = vsel %vm771_vm3, %v3936_v59, %v1245_v11  ;;  %v2407_v59 = vsel %vm771_vm3, %v3925_v10, %v2247_v36 }
  0xd1   : > { %640 = vrot.lane.b32.xlu0 %v609_v12, %s3655_s21 }
  0xd2   : > { %v1373_v1 = vpop.permute.xlu1 %1372 }
  0xd3   : > { %v1437_v20 = vsel %vm804_vm4, %v1405_v54, %v1373_v1  ;;  %v1247_v41 = vpop.permute.xlu0 %1246  ;;  %v4901_v54 = vld [vmem:[#allocation2_spill] sm:$0xff] }
  0xd4   : > { %2402 = vrot.lane.b32.xlu1 %v2370_v50, %s3654_s20  ;;  %3302 = vmatprep.mubr.msk.bf16.mxu1 %vm1462_vm5, %v1437_v20  ;;  %v1407_v33 = vsel %vm771_vm3, %v3957_v45, %v1247_v41  ;;  %v4900_v50 = vld [vmem:[#allocation3_spill] sm:$0xff] }
  0xd5   : > { %2276 = vrot.lane.b32.xlu0 %v2245_v14, %s3655_s21 }
  0xd6   : > { %v2375_v5 = vpop.permute.xlu1 %2374 }
  0xd7   : > { %v2439_v58 = vsel %vm804_vm4, %v2407_v59, %v2375_v5  ;;  %v2249_v13 = vpop.permute.xlu0 %2248 }
  0xd8   : > { %2404 = vrot.lane.b32.xlu1 %v2373_v15, %s3654_s20  ;;  %3354 = vmatprep.mubr.msk.bf16.mxu0 %vm1462_vm5, %v2439_v58  ;;  %v2409_v27 = vsel %vm771_vm3, %v3977_v61, %v2249_v13  ;;  %v4903_v58 = vld [vmem:[#allocation4_spill] sm:$0xff] }
  0xd9   : > { %769 = vrot.lane.b32.xlu0 %v738_v2, %s3654_s20 }
  0xda   : > { %v2377_v23 = vpop.permute.xlu1 %2376 }
  0xdb   : > { %v2441_v10 = vsel %vm804_vm4, %v2409_v27, %v2377_v23  ;;  %v1375_v21 = vpop.permute.xlu0 %1374 }
  0xdc   : > { %3355 = vmatmul.mubr.msk.bf16.vlgmr.msra.gmra.mrb[0].mxu0 %vm1462_vm5, %v2441_v10  ;;  %v1439_v24 = vsel %vm804_vm4, %v1407_v33, %v1375_v21  ;;  %v4904_v10 = vld [vmem:[#allocation7_spill] sm:$0xff] }
  0xdd   : > { %3303 = vmatmul.mubr.msk.bf16.gmra.mrb[16].mxu1 %vm1462_vm5, %v1439_v24 }
  0xde   : > { %v2251_v42 = vpop.permute.xlu1 %2250 }
  0xdf   : > { %v1249_v32 = vpop.permute.xlu0 %1248  ;;  %v2411_v45 = vsel %vm771_vm3, %v4007_v46, %v2251_v42  ;;  %v4905_v42 = vld [vmem:[#allocation6_spill] sm:$0xff] }
  0xe0   : > { %v1409_v61 = vsel %vm771_vm3, %v4014_v49, %v1249_v32 }
  0xe2   : > { %v1377_v43 = vpop.permute.xlu1 %1376 }
  0xe3   : > { %v1441_v28 = vsel %vm804_vm4, %v1409_v61, %v1377_v43  ;;  %v1251_v35 = vpop.permute.xlu0 %1250 }
  0xe4   : > { %3306 = vmatprep.mubr.msk.bf16.mxu1 %vm1462_vm5, %v1441_v28  ;;  %v1411_v37 = vsel %vm771_vm3, %v4038_v17, %v1251_v35 }
  0xe6   : > { %v2379_v44 = vpop.permute.xlu1 %2378 }
  0xe7   : > { %v2443_v62 = vsel %vm804_vm4, %v2411_v45, %v2379_v44  ;;  %v2253_v53 = vpop.permute.xlu0 %2252  ;;  %v4906_v45 = vld [vmem:[#allocation9_spill] sm:$0xff] }
  0xe8   : > { %3358 = vmatprep.mubr.msk.bf16.mxu0 %vm1462_vm5, %v2443_v62  ;;  %v2413_v52 = vsel %vm771_vm3, %v4059_v47, %v2253_v53 }
  0xea   : > { %v2381_v18 = vpop.permute.xlu1 %2380 }
  0xeb   : > { %v2445_v49 = vsel %vm804_vm4, %v2413_v52, %v2381_v18  ;;  %v1379_v9 = vpop.permute.xlu0 %1378  ;;  %v4907_v18 = vld [vmem:[#allocation8_spill] sm:$0xff] }
  0xec   : > { %3359 = vmatmul.mubr.msk.bf16.gmra.mrb[4].mxu0 %vm1462_vm5, %v2445_v49  ;;  %v1443_v46 = vsel %vm804_vm4, %v1411_v37, %v1379_v9 }
  0xed   : > { %3307 = vmatmul.mubr.msk.bf16.gmra.mrb[20].mxu1 %vm1462_vm5, %v1443_v46 }
  0xee   : > { %v2255_v31 = vpop.permute.xlu1 %2254 }
  0xef   : > { %v1253_v56 = vpop.permute.xlu0 %1252  ;;  %v2415_v17 = vsel %vm771_vm3, %v4079_v6, %v2255_v31 }
  0xf0   : > { %v1413_v36 = vsel %vm771_vm3, %v4098_v4, %v1253_v56 }
  0xf2   : > { %v1381_v12 = vpop.permute.xlu1 %1380 }
  0xf3   : > { %v1445_v47 = vsel %vm804_vm4, %v1413_v36, %v1381_v12  ;;  %v1255_v19 = vpop.permute.xlu0 %1254 }
  0xf4   : > { %3310 = vmatprep.mubr.msk.bf16.mxu1 %vm1462_vm5, %v1445_v47  ;;  %v1415_v1 = vsel %vm771_vm3, %v4901_v54, %v1255_v19 }
  0xf6   : > { %v2383_v39 = vpop.permute.xlu1 %2382 }
  0xf7   : > { %v2447_v51 = vsel %vm804_vm4, %v2415_v17, %v2383_v39  ;;  %v2257_v11 = vpop.permute.xlu0 %2256 }
  0xf8   : > { %3362 = vmatprep.mubr.msk.bf16.mxu0 %vm1462_vm5, %v2447_v51  ;;  %v2417_v7 = vsel %vm771_vm3, %v4900_v50, %v2257_v11 }
  0xfa   : > { %v2385_v29 = vpop.permute.xlu1 %2384 }
  0xfb   : > { %v2449_v4 = vsel %vm804_vm4, %v2417_v7, %v2385_v29  ;;  %v1383_v20 = vpop.permute.xlu0 %1382 }
  0xfc   : > { %3363 = vmatmul.mubr.msk.bf16.gmra.mrb[8].mxu0 %vm1462_vm5, %v2449_v4  ;;  %v1447_v6 = vsel %vm804_vm4, %v1415_v1, %v1383_v20 }
  0xfd   : > { %3311 = vmatmul.mubr.msk.bf16.gmra.mrb[24].mxu1 %vm1462_vm5, %v1447_v6 }
  0xfe   : > { %v2259_v14 = vpop.permute.xlu1 %2258 }
  0xff   : > { %v1257_v38 = vpop.permute.xlu0 %1256  ;;  %v2419_v2 = vsel %vm771_vm3, %v4903_v58, %v2259_v14 }
 0x100   : > { %v1417_v41 = vsel %vm771_vm3, %v4902_v16, %v1257_v38 }
 0x102   : > { %v1385_v15 = vpop.permute.xlu1 %1384 }
 0x103   : > { %v1449_v59 = vsel %vm804_vm4, %v1417_v41, %v1385_v15  ;;  %v1259_v5 = vpop.permute.xlu0 %1258 }
 0x104   : > { %3314 = vmatprep.mubr.msk.bf16.mxu1 %vm1462_vm5, %v1449_v59  ;;  %v1419_v32 = vsel %vm771_vm3, %v4905_v42, %v1259_v5 }
 0x106   : > { %v2387_v13 = vpop.permute.xlu1 %2386 }
 0x107   : > { %v2451_v27 = vsel %vm804_vm4, %v2419_v2, %v2387_v13  ;;  %v2261_v23 = vpop.permute.xlu0 %2260 }
 0x108   : > { %3366 = vmatprep.mubr.msk.bf16.mxu0 %vm1462_vm5, %v2451_v27  ;;  %v2421_v33 = vsel %vm771_vm3, %v4904_v10, %v2261_v23 }
 0x10a   : > { %v2389_v21 = vpop.permute.xlu1 %2388 }
 0x10b   : > { %v2453_v24 = vsel %vm804_vm4, %v2421_v33, %v2389_v21  ;;  %v1387_v61 = vpop.permute.xlu0 %1386 }
 0x10c   : > { %3367 = vmatmul.mubr.msk.bf16.gmra.mrb[12].mxu0 %vm1462_vm5, %v2453_v24  ;;  %v1451_v43 = vsel %vm804_vm4, %v1419_v32, %v1387_v61 }
 0x10d   : > { %3315 = vmatmul.mubr.msk.bf16.gmra.mrb[28].mxu1 %vm1462_vm5, %v1451_v43 }
 0x10e   : > { %v2263_v28 = vpop.permute.xlu1 %2262 }
 0x10f   : > { %v627_v35 = vpop.permute.xlu0 %626  ;;  %v2423_v49 = vsel %vm771_vm3, %v4907_v18, %v2263_v28 }
 0x110   : > { %v789_v44 = vsel %vm771_vm3, %v4906_v45, %v627_v35 }
 0x112   : > { %v756_v62 = vpop.permute.xlu1 %755 }
 0x113   : > { %v822_v53 = vsel %vm804_vm4, %v789_v44, %v756_v62  ;;  %v629_v52 = vpop.permute.xlu0 %628 }
 0x114   : > { %3336 = vmatprep.mubr.msk.bf16.mxu1 %vm1462_vm5, %v822_v53  ;;  %v791_v12 = vsel %vm771_vm3, %v4294_v30, %v629_v52 }
 0x116   : > { %v2391_v37 = vpop.permute.xlu1 %2390 }
 0x117   : > { %v2455_v9 = vsel %vm804_vm4, %v2423_v49, %v2391_v37  ;;  %v2265_v46 = vpop.permute.xlu0 %2264 }
 0x118   : > { %3370 = vmatprep.mubr.msk.bf16.mxu0 %vm1462_vm5, %v2455_v9  ;;  %v2425_v31 = vsel %vm771_vm3, %v4309_v25, %v2265_v46 }
 0x11a   : > { %v2393_v56 = vpop.permute.xlu1 %2392 }
 0x11b   : > { %v2457_v36 = vsel %vm804_vm4, %v2425_v31, %v2393_v56  ;;  %v758_v47 = vpop.permute.xlu0 %757 }
 0x11c   : > { %3371 = vmatmul.mubr.msk.bf16.gmra.mrb[16].mxu0 %vm1462_vm5, %v2457_v36  ;;  %v824_v19 = vsel %vm804_vm4, %v791_v12, %v758_v47 }
 0x11d   : > { %3337 = vmatmul.mubr.msk.bf16.vlgmr.msra.gmra.mrb[16].mxu1 %vm1462_vm5, %v824_v19 }
 0x11e   : > { %v2267_v17 = vpop.permute.xlu1 %2266 }
 0x11f   : > { %v631_v39 = vpop.permute.xlu0 %630  ;;  %v2427_v30 = vsel %vm771_vm3, %v4350_v8, %v2267_v17 }
 0x120   : > { %v793_v51 = vsel %vm771_vm3, %v4364_v57, %v631_v39  ;;  %v4800_v39 = vld [vmem:[%s4882_s2] ss:$0 sm:$0xff] }
 0x122   : > { %v760_v11 = vpop.permute.xlu1 %759 }
 0x123   : > { %v826_v25 = vsel %vm804_vm4, %v793_v51, %v760_v11  ;;  %v633_v50 = vpop.permute.xlu0 %632 }
 0x124   : > { %3340 = vmatprep.mubr.msk.bf16.mxu1 %vm1462_vm5, %v826_v25  ;;  %v795_v20 = vsel %vm771_vm3, %v4390_v40, %v633_v50 }
 0x126   : > { %v2395_v7 = vpop.permute.xlu1 %2394 }
 0x127   : > { %v2459_v29 = vsel %vm804_vm4, %v2427_v30, %v2395_v7  ;;  %v2269_v4 = vpop.permute.xlu0 %2268 }
 0x128   : > { %3374 = vmatprep.mubr.msk.bf16.mxu0 %vm1462_vm5, %v2459_v29  ;;  %v2429_v54 = vsel %vm771_vm3, %v4413_v26, %v2269_v4 }
 0x12a   : > { %v2397_v1 = vpop.permute.xlu1 %2396 }
 0x12b   : > { %v2461_v57 = vsel %vm804_vm4, %v2429_v54, %v2397_v1  ;;  %v762_v6 = vpop.permute.xlu0 %761 }
 0x12c   : > { %3375 = vmatmul.mubr.msk.bf16.gmra.mrb[20].mxu0 %vm1462_vm5, %v2461_v57  ;;  %v828_v8 = vsel %vm804_vm4, %v795_v20, %v762_v6 }
 0x12d   : > { %3341 = vmatmul.mubr.msk.bf16.gmra.mrb[20].mxu1 %vm1462_vm5, %v828_v8 }
 0x12e   : > { %v2271_v14 = vpop.permute.xlu1 %2270 }
 0x12f   : > { %v635_v38 = vpop.permute.xlu0 %634  ;;  %v2431_v40 = vsel %vm771_vm3, %v4455_v3, %v2271_v14 }
 0x130   : > { %v797_v16 = vsel %vm771_vm3, %v4462_v60, %v635_v38 }
 0x132   : > { %v764_v41 = vpop.permute.xlu1 %763 }
 0x133   : > { %v830_v26 = vsel %vm804_vm4, %v797_v16, %v764_v41  ;;  %v637_v15 = vpop.permute.xlu0 %636 }
 0x134   : > { %3344 = vmatprep.mubr.msk.bf16.mxu1 %vm1462_vm5, %v830_v26  ;;  %v799_v27 = vsel %vm771_vm3, %v4496_v0, %v637_v15 }
 0x136   : > { %v2399_v59 = vpop.permute.xlu1 %2398 }
 0x137   : > { %v2463_v5 = vsel %vm804_vm4, %v2431_v40, %v2399_v59  ;;  %v2273_v58 = vpop.permute.xlu0 %2272 }
 0x138   : > { %3378 = vmatprep.mubr.msk.bf16.mxu0 %vm1462_vm5, %v2463_v5  ;;  %v2433_v2 = vsel %vm771_vm3, %v4519_v48, %v2273_v58 }
 0x13a   : > { %v2401_v13 = vpop.permute.xlu1 %2400 }
 0x13b   : > { %v2465_v60 = vsel %vm804_vm4, %v2433_v2, %v2401_v13  ;;  %v766_v23 = vpop.permute.xlu0 %765 }
 0x13c   : > { %3379 = vmatmul.mubr.msk.bf16.gmra.mrb[24].mxu0 %vm1462_vm5, %v2465_v60  ;;  %v832_v3 = vsel %vm804_vm4, %v799_v27, %v766_v23 }
 0x13d   : > { %3345 = vmatmul.mubr.msk.bf16.gmra.mrb[24].mxu1 %vm1462_vm5, %v832_v3 }
 0x13e   : > { %v2275_v10 = vpop.permute.xlu1 %2274 }
 0x13f   : > { %v639_v33 = vpop.permute.xlu0 %638  ;;  %v2435_v0 = vsel %vm771_vm3, %v4553_v55, %v2275_v10 }
 0x140   : > { %v801_v21 = vsel %vm771_vm3, %v4562_v22, %v639_v33 }
 0x142   : > { %v768_v24 = vpop.permute.xlu1 %767 }
 0x143   : > { %v834_v48 = vsel %vm804_vm4, %v801_v21, %v768_v24  ;;  %v641_v42 = vpop.permute.xlu0 %640 }
 0x144   : > { %3348 = vmatprep.mubr.msk.bf16.mxu1 %vm1462_vm5, %v834_v48  ;;  %v803_v45 = vsel %vm771_vm3, %v4592_v34, %v641_v42 }
 0x146   : > { %v2403_v32 = vpop.permute.xlu1 %2402 }
 0x147   : > { %v2467_v61 = vsel %vm804_vm4, %v2435_v0, %v2403_v32  ;;  %v2277_v43 = vpop.permute.xlu0 %2276 }
 0x148   : > { %3382 = vmatprep.mubr.msk.bf16.mxu0 %vm1462_vm5, %v2467_v61  ;;  %v2437_v28 = vsel %vm771_vm3, %v4616_v63, %v2277_v43 }
 0x14a   : > { %v2405_v35 = vpop.permute.xlu1 %2404 }
 0x14b   : > { %v2469_v22 = vsel %vm804_vm4, %v2437_v28, %v2405_v35  ;;  %v770_v44 = vpop.permute.xlu0 %769 }
 0x14c   : > { %3383 = vmatmul.mubr.msk.bf16.gmra.mrb[28].mxu0 %vm1462_vm5, %v2469_v22  ;;  %v836_v55 = vsel %vm804_vm4, %v803_v45, %v770_v44 }
 0x14d   : > { %3349 = vmatmul.mubr.msk.bf16.gmra.mrb[28].mxu1 %vm1462_vm5, %v836_v55 }
 0x171   : > { %v3288_v62 = vpop.f32.mrb[0].mxu1 }
 0x172   : > { %v1533_v53 = vpop.f32.mrb[1].mxu1 }
 0x173   : > { %v3289_v52 = vpop.f32.mrb[2].mxu1 }
 0x174   : > { %v1536_v18 = vpop.f32.mrb[3].mxu1 }
 0x17f   : > { %v3292_v49 = vpop.f32.mrb[4].mxu1 }
 0x180   : > { %v1549_v63 = vpop.f32.mrb[5].mxu1 }
 0x181   : > { %v3293_v37 = vpop.f32.mrb[6].mxu1 }
 0x182   : > { %v1552_v9 = vpop.f32.mrb[7].mxu1 }
 0x18f   : > { %v3296_v46 = vpop.f32.mrb[8].mxu1 }
 0x190   : > { %v1565_v31 = vpop.f32.mrb[9].mxu1 }
 0x191   : > { %v3297_v56 = vpop.f32.mrb[10].mxu1 }
 0x192   : > { %v1568_v34 = vpop.f32.mrb[11].mxu1 }
 0x19f   : > { %v3300_v36 = vpop.f32.mrb[12].mxu1 }
 0x1a0   : > { %v1581_v12 = vpop.f32.mrb[13].mxu1 }
 0x1a1   : > { %v3301_v47 = vpop.f32.mrb[14].mxu1 }
 0x1a2   : > { %v1584_v19 = vpop.f32.mrb[15].mxu1 }
 0x1af   : > { %v3356_v17 = vpop.f32.mrb[0].mxu0 }
 0x1b0   : > { %v3388_v51 = vadd.f32 %v3356_v17, %v3288_v62  ;;  %v2549_v11 = vpop.f32.mrb[1].mxu0 }
 0x1b1   : > { %v3389_v25 = vadd.f32 %v2549_v11, %v1533_v53  ;;  %v3357_v50 = vpop.f32.mrb[2].mxu0 }
 0x1b2   : > { %v2717_v30 = vadd.f32 %v3388_v51, %v4800_v39  ;;  %v3390_v7 = vadd.f32 %v3357_v50, %v3289_v52  ;;  %v2552_v29 = vpop.f32.mrb[3].mxu0 }
 0x1b3   : > { %v2715_v4 = vadd.f32 %v3389_v25, %v4800_v39  ;;  %v3391_v54 = vadd.f32 %v2552_v29, %v1536_v18 }
 0x1b4   : > { %2749 = vst [vmem:[%s4805_s6 + $0x10] sm:$0xff] %v2717_v30  ;;  %v2718_v1 = vadd.f32 %v3390_v7, %v4800_v39 }
 0x1b5   : > { %2747 = vst [vmem:[%s4805_s6] sm:$0xff] %v2715_v4  ;;  %v2716_v57 = vadd.f32 %v3391_v54, %v4800_v39 }
 0x1b6   : > { %2750 = vst [vmem:[%s4805_s6 + $0x18] sm:$0xff] %v2718_v1 }
 0x1b7   : > { %2748 = vst [vmem:[%s4805_s6 + $0x8] sm:$0xff] %v2716_v57 }
 0x1bf   : > { %v3360_v20 = vpop.f32.mrb[4].mxu0 }
 0x1c0   : > { %v3392_v6 = vadd.f32 %v3360_v20, %v3292_v49  ;;  %v2565_v8 = vpop.f32.mrb[5].mxu0 }
 0x1c1   : > { %v3393_v14 = vadd.f32 %v2565_v8, %v1549_v63  ;;  %v3361_v38 = vpop.f32.mrb[6].mxu0 }
 0x1c2   : > { %v2721_v16 = vadd.f32 %v3392_v6, %v4800_v39  ;;  %v3394_v41 = vadd.f32 %v3361_v38, %v3293_v37  ;;  %v2568_v26 = vpop.f32.mrb[7].mxu0 }
 0x1c3   : > { %v2719_v15 = vadd.f32 %v3393_v14, %v4800_v39  ;;  %v3395_v40 = vadd.f32 %v2568_v26, %v1552_v9 }
 0x1c4   : > { %2753 = vst [vmem:[%s4805_s6 + $0x30] sm:$0xff] %v2721_v16  ;;  %v2722_v59 = vadd.f32 %v3394_v41, %v4800_v39 }
 0x1c5   : > { %2751 = vst [vmem:[%s4805_s6 + $0x20] sm:$0xff] %v2719_v15  ;;  %v2720_v5 = vadd.f32 %v3395_v40, %v4800_v39 }
 0x1c6   : > { %2754 = vst [vmem:[%s4805_s6 + $0x38] sm:$0xff] %v2722_v59 }
 0x1c7   : > { %2752 = vst [vmem:[%s4805_s6 + $0x28] sm:$0xff] %v2720_v5 }
 0x1cf   : > { %v3364_v58 = vpop.f32.mrb[8].mxu0 }
 0x1d0   : > { %v3396_v2 = vadd.f32 %v3364_v58, %v3296_v46  ;;  %v2581_v13 = vpop.f32.mrb[9].mxu0 }
 0x1d1   : > { %v3397_v60 = vadd.f32 %v2581_v13, %v1565_v31  ;;  %v3365_v27 = vpop.f32.mrb[10].mxu0 }
 0x1d2   : > { %v2725_v23 = vadd.f32 %v3396_v2, %v4800_v39  ;;  %v3398_v3 = vadd.f32 %v3365_v27, %v3297_v56  ;;  %v2584_v10 = vpop.f32.mrb[11].mxu0 }
 0x1d3   : > { %v2723_v33 = vadd.f32 %v3397_v60, %v4800_v39  ;;  %v3399_v21 = vadd.f32 %v2584_v10, %v1568_v34 }
 0x1d4   : > { %2757 = vst [vmem:[%s4805_s6 + $0x50] sm:$0xff] %v2725_v23  ;;  %v2726_v24 = vadd.f32 %v3398_v3, %v4800_v39 }
 0x1d5   : > { %2755 = vst [vmem:[%s4805_s6 + $0x40] sm:$0xff] %v2723_v33  ;;  %v2724_v48 = vadd.f32 %v3399_v21, %v4800_v39 }
 0x1d6   : > { %2758 = vst [vmem:[%s4805_s6 + $0x58] sm:$0xff] %v2726_v24 }
 0x1d7   : > { %2756 = vst [vmem:[%s4805_s6 + $0x48] sm:$0xff] %v2724_v48 }
 0x1df   : > { %v3368_v42 = vpop.f32.mrb[12].mxu0 }
 0x1e0   : > { %v3400_v0 = vadd.f32 %v3368_v42, %v3300_v36  ;;  %v2597_v32 = vpop.f32.mrb[13].mxu0 }
 0x1e1   : > { %v3401_v61 = vadd.f32 %v2597_v32, %v1581_v12  ;;  %v3369_v43 = vpop.f32.mrb[14].mxu0 }
 0x1e2   : > { %v2729_v28 = vadd.f32 %v3400_v0, %v4800_v39  ;;  %v3402_v35 = vadd.f32 %v3369_v43, %v3301_v47  ;;  %v2600_v22 = vpop.f32.mrb[15].mxu0 }
 0x1e3   : > { %v2727_v45 = vadd.f32 %v3401_v61, %v4800_v39  ;;  %v3403_v44 = vadd.f32 %v2600_v22, %v1584_v19 }
 0x1e4   : > { %2761 = vst [vmem:[%s4805_s6 + $0x70] sm:$0xff] %v2729_v28  ;;  %v2730_v55 = vadd.f32 %v3402_v35, %v4800_v39 }
 0x1e5   : > { %2759 = vst [vmem:[%s4805_s6 + $0x60] sm:$0xff] %v2727_v45  ;;  %v2728_v62 = vadd.f32 %v3403_v44, %v4800_v39 }
 0x1e6   : > { %2762 = vst [vmem:[%s4805_s6 + $0x78] sm:$0xff] %v2730_v55 }
 0x1e7   : > { %2760 = vst [vmem:[%s4805_s6 + $0x68] sm:$0xff] %v2728_v62 }
 0x1ef   : > { %v3372_v53 = vpop.f32.mrb[16].mxu0 }
 0x1f0   : > { %v2613_v52 = vpop.f32.mrb[17].mxu0  ;;  %v3338_v18 = vpop.f32.mrb[16].mxu1 }
 0x1f1   : > { %v3373_v49 = vpop.f32.mrb[18].mxu0  ;;  %v3404_v63 = vadd.f32 %v3372_v53, %v3338_v18  ;;  %v1798_v37 = vpop.f32.mrb[17].mxu1 }
 0x1f2   : > { %v2616_v9 = vpop.f32.mrb[19].mxu0  ;;  %v3405_v46 = vadd.f32 %v2613_v52, %v1798_v37  ;;  %v3339_v31 = vpop.f32.mrb[18].mxu1 }
 0x1f3   : > { %v2733_v56 = vadd.f32 %v3404_v63, %v4800_v39  ;;  %v3406_v34 = vadd.f32 %v3373_v49, %v3339_v31  ;;  %v1801_v36 = vpop.f32.mrb[19].mxu1 }
 0x1f4   : > { %v2731_v12 = vadd.f32 %v3405_v46, %v4800_v39  ;;  %v3407_v47 = vadd.f32 %v2616_v9, %v1801_v36 }
 0x1f5   : > { %2765 = vst [vmem:[%s4805_s6 + $0x90] sm:$0xff] %v2733_v56  ;;  %v2734_v19 = vadd.f32 %v3406_v34, %v4800_v39 }
 0x1f6   : > { %2763 = vst [vmem:[%s4805_s6 + $0x80] sm:$0xff] %v2731_v12  ;;  %v2732_v17 = vadd.f32 %v3407_v47, %v4800_v39 }
 0x1f7   : > { %2766 = vst [vmem:[%s4805_s6 + $0x98] sm:$0xff] %v2734_v19 }
 0x1f8   : > { %2764 = vst [vmem:[%s4805_s6 + $0x88] sm:$0xff] %v2732_v17 }
 0x1ff   : > { %v3376_v51 = vpop.f32.mrb[20].mxu0 }
 0x200   : > { %v2629_v11 = vpop.f32.mrb[21].mxu0  ;;  %v3342_v25 = vpop.f32.mrb[20].mxu1 }
 0x201   : > { %v3377_v50 = vpop.f32.mrb[22].mxu0  ;;  %v3408_v30 = vadd.f32 %v3376_v51, %v3342_v25  ;;  %v1814_v7 = vpop.f32.mrb[21].mxu1 }
 0x202   : > { %v2632_v29 = vpop.f32.mrb[23].mxu0  ;;  %v3409_v4 = vadd.f32 %v2629_v11, %v1814_v7  ;;  %v3343_v54 = vpop.f32.mrb[22].mxu1 }
 0x203   : > { %v2737_v1 = vadd.f32 %v3408_v30, %v4800_v39  ;;  %v3410_v57 = vadd.f32 %v3377_v50, %v3343_v54  ;;  %v1817_v20 = vpop.f32.mrb[23].mxu1 }
 0x204   : > { %v2735_v6 = vadd.f32 %v3409_v4, %v4800_v39  ;;  %v3411_v8 = vadd.f32 %v2632_v29, %v1817_v20 }
 0x205   : > { %2769 = vst [vmem:[%s4805_s6 + $0xb0] sm:$0xff] %v2737_v1  ;;  %v2738_v14 = vadd.f32 %v3410_v57, %v4800_v39 }
 0x206   : > { %2767 = vst [vmem:[%s4805_s6 + $0xa0] sm:$0xff] %v2735_v6  ;;  %v2736_v38 = vadd.f32 %v3411_v8, %v4800_v39 }
 0x207   : > { %2770 = vst [vmem:[%s4805_s6 + $0xb8] sm:$0xff] %v2738_v14 }
 0x208   : > { %2768 = vst [vmem:[%s4805_s6 + $0xa8] sm:$0xff] %v2736_v38 }
 0x20f   : > { %v3380_v16 = vpop.f32.mrb[24].mxu0 }
 0x210   : > { %v2645_v41 = vpop.f32.mrb[25].mxu0  ;;  %v3346_v26 = vpop.f32.mrb[24].mxu1 }
 0x211   : > { %v3381_v15 = vpop.f32.mrb[26].mxu0  ;;  %v3412_v40 = vadd.f32 %v3380_v16, %v3346_v26  ;;  %v1830_v59 = vpop.f32.mrb[25].mxu1 }
 0x212   : > { %v2648_v5 = vpop.f32.mrb[27].mxu0  ;;  %v3413_v58 = vadd.f32 %v2645_v41, %v1830_v59  ;;  %v3347_v2 = vpop.f32.mrb[26].mxu1 }
 0x213   : > { %v2741_v13 = vadd.f32 %v3412_v40, %v4800_v39  ;;  %v3414_v60 = vadd.f32 %v3381_v15, %v3347_v2  ;;  %v1833_v27 = vpop.f32.mrb[27].mxu1 }
 0x214   : > { %v2739_v23 = vadd.f32 %v3413_v58, %v4800_v39  ;;  %v3415_v3 = vadd.f32 %v2648_v5, %v1833_v27 }
 0x215   : > { %2773 = vst [vmem:[%s4805_s6 + $0xd0] sm:$0xff] %v2741_v13  ;;  %v2742_v10 = vadd.f32 %v3414_v60, %v4800_v39 }
 0x216   : > { %2771 = vst [vmem:[%s4805_s6 + $0xc0] sm:$0xff] %v2739_v23  ;;  %v2740_v33 = vadd.f32 %v3415_v3, %v4800_v39 }
 0x217   : > { %2774 = vst [vmem:[%s4805_s6 + $0xd8] sm:$0xff] %v2742_v10 }
 0x218   : > { %2772 = vst [vmem:[%s4805_s6 + $0xc8] sm:$0xff] %v2740_v33 }
 0x21f   : > { %v3384_v21 = vpop.f32.mrb[28].mxu0 }
 0x220   : > { %v2661_v24 = vpop.f32.mrb[29].mxu0  ;;  %v3350_v48 = vpop.f32.mrb[28].mxu1 }
 0x221   : > { %v3385_v42 = vpop.f32.mrb[30].mxu0  ;;  %v3416_v0 = vadd.f32 %v3384_v21, %v3350_v48  ;;  %v1846_v32 = vpop.f32.mrb[29].mxu1 }
 0x222   : > { %v2664_v61 = vpop.f32.mrb[31].mxu0  ;;  %v3417_v43 = vadd.f32 %v2661_v24, %v1846_v32  ;;  %v3351_v28 = vpop.f32.mrb[30].mxu1 }
 0x223   : > { %v2745_v35 = vadd.f32 %v3416_v0, %v4800_v39  ;;  %v3418_v22 = vadd.f32 %v3385_v42, %v3351_v28  ;;  %v1849_v45 = vpop.f32.mrb[31].mxu1 }
 0x224   : > { %v2743_v44 = vadd.f32 %v3417_v43, %v4800_v39  ;;  %v3419_v55 = vadd.f32 %v2664_v61, %v1849_v45 }
 0x225   : > { %2777 = vst [vmem:[%s4805_s6 + $0xf0] sm:$0xff] %v2745_v35  ;;  %v2746_v62 = vadd.f32 %v3418_v22, %v4800_v39 }
 0x226   : > { %2775 = vst [vmem:[%s4805_s6 + $0xe0] sm:$0xff] %v2743_v44  ;;  %v2744_v53 = vadd.f32 %v3419_v55, %v4800_v39 }
 0x227   : > { %2778 = vst [vmem:[%s4805_s6 + $0xf8] sm:$0xff] %v2746_v62 }
 0x228   : > { %2776 = vst [vmem:[%s4805_s6 + $0xe8] sm:$0xff] %v2744_v53 }
 0x229 PF: > { %s13_s14 = sadd.s32 1, %s3652_s14   ;;  %s4908_s12 = smov %s3648_s13 }
 0x22a   : > { %p10_p5 = scmp.ge.s32.totalorder %s13_s14, 4   ;;  %s4909_s13 = smov %s4911_s15 }
 0x22c   :  { %12 = sbr.rel (!%p10_p5) target bundleno = 2 (0x2), region = 70 }

</bundles_post_ra>
